<compile_context>
chip_gen: v7x
topology: tpu7x:2x2x1
jax: 0.10.0
libtpu: 0.0.40
codegen_flags: <defaults>
</compile_context>

<pallas_src>
import functools

import jax
import jax.numpy as jnp
from jax import lax
from jax.experimental import pallas as pl
from jax.experimental.pallas import tpu as pltpu


# ----------------------------------------------------------------------------
# small static helpers
# ----------------------------------------------------------------------------
def _round_up(n, m):
    return ((n + m - 1) // m) * m


def _chunk_len(n, target):
    """Largest divisor of n that is <= target (>= 1)."""
    best = 1
    for d in range(1, min(n, target) + 1):
        if n % d == 0:
            best = d
    return best


def _tile_len(n, cap, quantum):
    """Largest divisor of n that is a multiple of `quantum` and <= cap (n itself if small)."""
    if n <= cap:
        return n
    best = quantum
    for d in range(quantum, cap + 1, quantum):
        if n % d == 0:
            best = d
    return best


# ----------------------------------------------------------------------------
# Fused GRU kernel.  PyTorch GRUCell semantics, gates fused [r | z | n] on the lane axis:
#   r = sigmoid(x W_ir + h W_hr + (b_ir + b_hr))
#   z = sigmoid(x W_iz + h W_hz + (b_iz + b_hz))
#   n = tanh   (x W_in + b_in + r * (h W_hn + b_hn))
#   h' = (1 - z) * n + z * h
# Grid = (num_dirs, num_time_chunks); direction 1 (if present) runs time-reversed but
# writes its outputs at the natural time positions (PyTorch bidirectional convention).
# ----------------------------------------------------------------------------
def gru_kernel(x_ref, h0_ref, wih_ref, whh_ref, bih_ref, bhhn_ref,
               out_ref, hfin_ref, h_sc, xg_sc, *, ts, batch, hidden, num_chunks):
    H = hidden
    rev = pl.program_id(0)          # direction index; direction 1 is the backward pass
    c = pl.program_id(1)            # time-chunk index ("arbitrary" axis)

    @pl.when(c == 0)
    def _():                        # (re)load the initial hidden state per direction
        h_sc[...] = h0_ref[0]

    # Hoisted chunk input projection: ONE lane-dense MXU matmul for all timesteps of the
    # chunk and all 3 gates; input bias + folded (r,z) recurrent bias added once here.
    xg_sc[...] = (jnp.dot(x_ref[...], wih_ref[0],
                          preferred_element_type=jnp.float32) + bih_ref[0])

    whh = whh_ref[0]                # (H, 3H) bf16, read once per chunk
    bhh_n = bhhn_ref[0]             # (1, H)  f32, n-gate recurrent bias only

    def step(i, h):
        # within-chunk time index: i for the forward direction, ts-1-i for the backward one
        t = i + rev * (ts - 1 - 2 * i)
        off = pl.multiple_of(t * batch, batch)      # batch padded to 8 -> aligned start
        xg_t = xg_sc[pl.ds(off, batch), :]          # (B, 3H)
        # Single fused recurrent matmul per step (3 gates in one MXU push).
        hg = jnp.dot(h.astype(jnp.bfloat16), whh,
                     preferred_element_type=jnp.float32)   # (B, 3H)
        r = jax.nn.sigmoid(xg_t[:, :H] + hg[:, :H])
        z = jax.nn.sigmoid(xg_t[:, H:2 * H] + hg[:, H:2 * H])
        n = jnp.tanh(xg_t[:, 2 * H:] + r * (hg[:, 2 * H:] + bhh_n))
        h_new = (1.0 - z) * n + z * h
        out_ref[t] = h_new.astype(out_ref.dtype)    # bf16 activation output
        return h_new

    h = lax.fori_loop(0, ts, step, h_sc[...], unroll=True)   # h carried in vregs
    h_sc[...] = h                                            # carry across chunks
    hfin_ref[0] = h                                          # final f32 hidden state


def gru_forward(x2d, h0, wih, whh, bih, bhhn, *,
                num_dirs, seq_len, batch, hidden, time_chunk=4):
    """x2d: (S*Bp, E) bf16 time-major flattened.  Weights are already bf16 / gate-fused.

    Returns (outputs (num_dirs, S, Bp, H) bf16, h_final (num_dirs, Bp, H) f32).
    time_chunk is kept small here to exercise the pipelined multi-chunk path; raise it
    for longer sequences up to the VMEM budget.
    """
    E = x2d.shape[1]
    H = hidden
    ts = _chunk_len(seq_len, time_chunk)
    num_chunks = seq_len // ts

    def _ceff(d, c):                       # c for direction 0, num_chunks-1-c for direction 1
        return c + d * (num_chunks - 1 - 2 * c)

    x_map = lambda d, c: (_ceff(d, c), 0)
    wt_map = lambda d, c: (d, 0, 0)
    out_map = lambda d, c: (d * num_chunks + _ceff(d, c), 0, 0)

    out, hfin = pl.pallas_call(
        functools.partial(gru_kernel, ts=ts, batch=batch, hidden=H,
                          num_chunks=num_chunks),
        grid=(num_dirs, num_chunks),
        out_shape=(jax.ShapeDtypeStruct((num_dirs * seq_len, batch, H), jnp.bfloat16),
                   jax.ShapeDtypeStruct((num_dirs, batch, H), jnp.float32)),
        in_specs=[
            pl.BlockSpec((ts * batch, E), x_map),          # x chunk (pipelined)
            pl.BlockSpec((1, batch, H), wt_map),           # h0 per direction
            pl.BlockSpec((1, E, 3 * H), wt_map),           # W_ih per direction
            pl.BlockSpec((1, H, 3 * H), wt_map),           # W_hh per direction
            pl.BlockSpec((1, 1, 3 * H), wt_map),           # fused input bias
            pl.BlockSpec((1, 1, H), wt_map),               # n-gate recurrent bias
        ],
        out_specs=(pl.BlockSpec((ts, batch, H), out_map),
                   pl.BlockSpec((1, batch, H), wt_map)),
        scratch_shapes=[pltpu.VMEM((batch, H), jnp.float32),          # carried hidden
                        pltpu.VMEM((ts * batch, 3 * H), jnp.float32)],  # hoisted xg chunk
        compiler_params=pltpu.CompilerParams(
            dimension_semantics=("parallel", "arbitrary"),
            vmem_limit_bytes=32 * 1024 * 1024),
    )(x2d, h0, wih, whh, bih, bhhn)
    return out.reshape(num_dirs, seq_len, batch, H), hfin


# ----------------------------------------------------------------------------
# Attention context kernel (one batch row per "parallel" grid step):
#   scores = dec @ enc^T          (T, S)   — softmax reduction on the lane axis
#   a_t    = softmax(scores, -1)           (== torch.softmax(dim=1) on the (B,S,T) layout)
#   c_t    = a_t @ enc            (T, 2H)
# ----------------------------------------------------------------------------
def attn_ctx_kernel(enc_ref, dec_ref, ctx_ref):
    enc = enc_ref[0]                                    # (S, 2H) bf16
    dec = dec_ref[0]                                    # (T, 2H) bf16
    scores = lax.dot_general(dec, enc, (((1,), (1,)), ((), ())),
                             preferred_element_type=jnp.float32)      # (T, S)
    a_t = jax.nn.softmax(scores, axis=-1)
    ctx_ref[0] = jnp.dot(a_t.astype(jnp.bfloat16), enc,
                         preferred_element_type=jnp.float32).astype(ctx_ref.dtype)


def attn_context(enc_output, dec_output):
    Bp, S, H2 = enc_output.shape
    _, T, _ = dec_output.shape
    # TODO(synk): for large B, block several batch rows per grid step (batched einsum)
    # to amortize the ~0.35 us per-grid-step overhead.
    return pl.pallas_call(
        attn_ctx_kernel,
        grid=(Bp,),
        out_shape=jax.ShapeDtypeStruct((Bp, T, H2), jnp.bfloat16),
        in_specs=[pl.BlockSpec((1, S, H2), lambda b: (b, 0, 0)),
                  pl.BlockSpec((1, T, H2), lambda b: (b, 0, 0))],
        out_specs=pl.BlockSpec((1, T, H2), lambda b: (b, 0, 0)),
        compiler_params=pltpu.CompilerParams(
            dimension_semantics=("parallel",)),
    )(enc_output, dec_output)


# ----------------------------------------------------------------------------
# Flattened head kernel over rows = B*T (fills the MXU M dimension):
#   out    = tanh(ctx @ W_c + dec @ W_d + b_att)     (concat-free attention_fc)
#   logits = out @ W_fc_tile + b_fc_tile             (vocab tiled on the lane axis)
# out is computed once per row tile (vocab tile 0) into a VMEM scratch and re-used.
# ----------------------------------------------------------------------------
def head_kernel(ctx_ref, dec_ref, wc_ref, wd_ref, batt_ref, wfc_ref, bfc_ref,
                logits_ref, out_sc):
    @pl.when(pl.program_id(1) == 0)
    def _():
        pre = (jnp.dot(ctx_ref[...], wc_ref[...], preferred_element_type=jnp.float32)
               + jnp.dot(dec_ref[...], wd_ref[...], preferred_element_type=jnp.float32)
               + batt_ref[...])
        out_sc[...] = jnp.tanh(pre).astype(out_sc.dtype)

    logits_ref[...] = (jnp.dot(out_sc[...], wfc_ref[...],
                               preferred_element_type=jnp.float32) + bfc_ref[...])


def attn_head(ctx2d, dec2d, w_c, w_d, b_att, w_fc_p, b_fc_p, *,
              row_cap=512, vocab_cap=512):
    R, H2 = ctx2d.shape
    Vp = w_fc_p.shape[1]
    TR = _tile_len(R, row_cap, 8)          # rows (multiple of 8 by construction)
    TV = _tile_len(Vp, vocab_cap, 128)     # lane-dense vocab tiles

    return pl.pallas_call(
        head_kernel,
        grid=(R // TR, Vp // TV),
        out_shape=jax.ShapeDtypeStruct((R, Vp), jnp.float32),
        in_specs=[
            pl.BlockSpec((TR, H2), lambda r, v: (r, 0)),
            pl.BlockSpec((TR, H2), lambda r, v: (r, 0)),
            pl.BlockSpec((H2, H2), lambda r, v: (0, 0)),
            pl.BlockSpec((H2, H2), lambda r, v: (0, 0)),
            pl.BlockSpec((1, H2), lambda r, v: (0, 0)),
            pl.BlockSpec((H2, TV), lambda r, v: (0, v)),   # vocab weight tiles stream
            pl.BlockSpec((1, TV), lambda r, v: (0, v)),
        ],
        out_specs=pl.BlockSpec((TR, TV), lambda r, v: (r, v)),
        scratch_shapes=[pltpu.VMEM((TR, H2), jnp.bfloat16)],
        compiler_params=pltpu.CompilerParams(
            dimension_semantics=("parallel", "arbitrary"),
            vmem_limit_bytes=32 * 1024 * 1024),
    )(ctx2d, dec2d, w_c, w_d, b_att, w_fc_p, b_fc_p)


# ----------------------------------------------------------------------------
# Full Seq2Seq forward (glue in plain JAX: embedding gathers, batch padding, small
# concat/transpose layout plumbing).
# ----------------------------------------------------------------------------
def seq2seq_forward(params, enc_input, dec_input, hidden_type='cat'):
    B, S = enc_input.shape
    _, T = dec_input.shape
    Bp = _round_up(B, 8)                                   # sublane-aligned batch
    H = params['enc_whh'].shape[1]
    H2 = 2 * H
    V = params['dec_embedding'].shape[0]

    # ---------------- Encoder: bidirectional GRU in ONE fused pallas_call ----------------
    enc_emb = jnp.take(params['enc_embedding'], enc_input, axis=0)        # (B, S, E) bf16
    x_tm = jnp.pad(jnp.transpose(enc_emb, (1, 0, 2)),
                   ((0, 0), (0, Bp - B), (0, 0)))                         # (S, Bp, E)
    E = x_tm.shape[-1]
    h0 = jnp.zeros((2, Bp, H), jnp.float32)
    enc_out, enc_hfin = gru_forward(
        x_tm.reshape(S * Bp, E), h0,
        params['enc_wih'], params['enc_whh'], params['enc_bih'], params['enc_bhhn'],
        num_dirs=2, seq_len=S, batch=Bp, hidden=H)
    # TODO(synk): with H a multiple of 128 the two directions could be written straight
    # into the lane-halves of one (S,B,2H) output via the out index_map (no concat pass);
    # at toy H that violates the (8,128) BlockSpec constraint, so concat in bf16 here.
    enc_output = jnp.transpose(jnp.concatenate([enc_out[0], enc_out[1]], axis=-1),
                               (1, 0, 2))                                 # (Bp, S, 2H) bf16

    h_f, h_b = enc_hfin[0], enc_hfin[1]
    if hidden_type == 'sum':
        dec_h0 = jnp.dot(h_f + h_b, params['ht_w']) + params['ht_b']
    elif hidden_type == 'mul':
        dec_h0 = jnp.dot(h_f * h_b, params['ht_w']) + params['ht_b']
    else:  # 'cat' (default) and fallback
        dec_h0 = jnp.concatenate([h_f, h_b], axis=1)                      # (Bp, 2H) f32

    # ---------------- Decoder GRU (hidden size 2H) ----------------
    dec_emb = jnp.take(params['dec_embedding'], dec_input, axis=0)        # (B, T, E) bf16
    d_tm = jnp.pad(jnp.transpose(dec_emb, (1, 0, 2)),
                   ((0, 0), (0, Bp - B), (0, 0)))                         # (T, Bp, E)
    dec_out, dec_hfin = gru_forward(
        d_tm.reshape(T * Bp, E), dec_h0[None],
        params['dec_wih'], params['dec_whh'], params['dec_bih'], params['dec_bhhn'],
        num_dirs=1, seq_len=T, batch=Bp, hidden=H2)
    dec_output = jnp.transpose(dec_out[0], (1, 0, 2))                     # (Bp, T, 2H) bf16

    # ---------------- Attention + fused attention_fc / fc head ----------------
    ctx = attn_context(enc_output, dec_output)                            # (Bp, T, 2H) bf16
    logits_p = attn_head(ctx.reshape(Bp * T, H2), dec_output.reshape(Bp * T, H2),
                         params['att_wc'], params['att_wd'], params['att_b'],
                         params['fc_w_p'], params['fc_b_p'])              # (Bp*T, Vp) f32
    logits = logits_p.reshape(Bp, T, -1)[:B, :, :V]                       # (B, T, V)
    hidden = dec_hfin[:, :B, :]                                           # (1, B, 2H)
    return logits, hidden


# ----------------------------------------------------------------------------
# Deterministic parameter init (synthetic weights, PyTorch-equivalent shapes, already
# gate-fused / transposed / bf16-cast / vocab-padded so the jitted forward does no
# per-call weight preprocessing).
# ----------------------------------------------------------------------------
def init_params(key, enc_vocab, dec_vocab, emb_dim, hidden):
    H, H2, E = hidden, 2 * hidden, emb_dim
    Vp = _round_up(dec_vocab, 128)
    keys = iter(jax.random.split(key, 21))

    def w(shape, scale=0.1):
        return (scale * jax.random.normal(next(keys), shape)).astype(jnp.float32)

    def gru(in_dim, h_dim, num_dirs):
        wih = jnp.stack([w((in_dim, 3 * h_dim)) for _ in range(num_dirs)])
        whh = jnp.stack([w((h_dim, 3 * h_dim)) for _ in range(num_dirs)])
        bih = jnp.stack([w((1, 3 * h_dim)) for _ in range(num_dirs)])
        bhh = jnp.stack([w((1, 3 * h_dim)) for _ in range(num_dirs)])
        # Fold the r/z halves of the recurrent bias into the input bias; only the n-gate
        # recurrent bias must stay inside the r * (...) term of the recurrence.
        bih_fused = bih.at[:, :, :2 * h_dim].add(bhh[:, :, :2 * h_dim])
        bhh_n = bhh[:, :, 2 * h_dim:]
        return (wih.astype(jnp.bfloat16), whh.astype(jnp.bfloat16), bih_fused, bhh_n)

    # TODO(synk): nn.Dropout inside a single-layer nn.GRU has no effect at forward time; omitted.
    enc_embedding = w((enc_vocab, E)).astype(jnp.bfloat16)
    dec_embedding = w((dec_vocab, E)).astype(jnp.bfloat16)
    enc_wih, enc_whh, enc_bih, enc_bhhn = gru(E, H, 2)     # dir 0 = forward, dir 1 = backward
    dec_wih, dec_whh, dec_bih, dec_bhhn = gru(E, H2, 1)
    att_wc = w((H2, H2)).astype(jnp.bfloat16)              # attention_fc: c_t half
    att_wd = w((H2, H2)).astype(jnp.bfloat16)              # attention_fc: dec half
    att_b = w((1, H2))
    fc_w = w((H2, dec_vocab))
    fc_b = w((1, dec_vocab))
    fc_w_p = jnp.pad(fc_w, ((0, 0), (0, Vp - dec_vocab))).astype(jnp.bfloat16)
    fc_b_p = jnp.pad(fc_b, ((0, 0), (0, Vp - dec_vocab)))
    ht_w = w((H, H2))                                      # hidden_transform ('sum'/'mul' only)
    ht_b = w((1, H2))

    return dict(
        enc_embedding=enc_embedding, dec_embedding=dec_embedding,
        enc_wih=enc_wih, enc_whh=enc_whh, enc_bih=enc_bih, enc_bhhn=enc_bhhn,
        dec_wih=dec_wih, dec_whh=dec_whh, dec_bih=dec_bih, dec_bhhn=dec_bhhn,
        att_wc=att_wc, att_wd=att_wd, att_b=att_b,
        fc_w_p=fc_w_p, fc_b_p=fc_b_p,
        ht_w=ht_w, ht_b=ht_b,
    )


if __name__ == "__main__":
    key = jax.random.PRNGKey(0)
    k_param, k_enc, k_dec = jax.random.split(key, 3)

    B, S_enc, T_dec = 2, 8, 6
    emb_dim, hidden = 16, 16
    enc_vocab, dec_vocab = 32, 40

    params = init_params(k_param, enc_vocab, dec_vocab, emb_dim, hidden)
    enc_input = jax.random.randint(k_enc, (B, S_enc), 0, enc_vocab, dtype=jnp.int32)
    dec_input = jax.random.randint(k_dec, (B, T_dec), 0, dec_vocab, dtype=jnp.int32)

    fwd = jax.jit(lambda p, e, d: seq2seq_forward(p, e, d, hidden_type='cat'))
    logits, hidden_out = fwd(params, enc_input, dec_input)
    jax.block_until_ready((logits, hidden_out))

    assert logits.shape == (B, T_dec, dec_vocab), logits.shape
    assert hidden_out.shape == (1, B, 2 * hidden), hidden_out.shape
    assert bool(jnp.all(jnp.isfinite(logits)))
    print("KERNEL_OK")
</pallas_src>

<mosaic_0001>
module attributes {stable_mosaic.version = 11 : i64} {
  func.func @gru_kernel(%arg0: i32, %arg1: i32, %arg2: memref<32x16xbf16, #tpu.memory_space<vmem>>, %arg3: memref<1x8x16xf32, #tpu.memory_space<vmem>>, %arg4: memref<1x16x48xbf16, #tpu.memory_space<vmem>>, %arg5: memref<1x16x48xbf16, #tpu.memory_space<vmem>>, %arg6: memref<1x1x48xf32, #tpu.memory_space<vmem>>, %arg7: memref<1x1x16xf32, #tpu.memory_space<vmem>>, %arg8: memref<4x8x16xbf16, #tpu.memory_space<vmem>>, %arg9: memref<1x8x16xf32, #tpu.memory_space<vmem>>, %arg10: memref<8x16xf32, #tpu.memory_space<vmem>>, %arg11: memref<32x48xf32, #tpu.memory_space<vmem>>) attributes {dimension_semantics = [#tpu.dimension_semantics<parallel>, #tpu.dimension_semantics<arbitrary>], iteration_bounds = array<i64: 2, 2>, scalar_prefetch = 0 : i64, scratch_operands = 2 : i64, tpu.core_type = #tpu.core_type<tc>, window_params = [{transform_indices = @transform_0, window_bounds = array<i64: 32, 16>}, {transform_indices = @transform_1, window_bounds = array<i64: 1, 8, 16>}, {transform_indices = @transform_2, window_bounds = array<i64: 1, 16, 48>}, {transform_indices = @transform_3, window_bounds = array<i64: 1, 16, 48>}, {transform_indices = @transform_4, window_bounds = array<i64: 1, 1, 48>}, {transform_indices = @transform_5, window_bounds = array<i64: 1, 1, 16>}, {transform_indices = @transform_6, window_bounds = array<i64: 4, 8, 16>}, {transform_indices = @transform_7, window_bounds = array<i64: 1, 8, 16>}]} {
    %c0_i32 = arith.constant 0 : i32
    %0 = arith.cmpi eq, %arg1, %c0_i32 : i32
    %1 = arith.extui %0 : i1 to i32
    %c0_i32_0 = arith.constant 0 : i32
    %2 = arith.cmpi ne, %1, %c0_i32_0 : i32
    scf.if %2 {
      %c0_63 = arith.constant 0 : index
      %c0_64 = arith.constant 0 : index
      %c0_65 = arith.constant 0 : index
      %193 = vector.load %arg3[%c0_63, %c0_64, %c0_65] : memref<1x8x16xf32, #tpu.memory_space<vmem>>, vector<1x8x16xf32>
      %194 = vector.shape_cast %193 : vector<1x8x16xf32> to vector<8x16xf32>
      %c0_66 = arith.constant 0 : index
      %c0_67 = arith.constant 0 : index
      %195 = vector.load %arg10[%c0_66, %c0_67] : memref<8x16xf32, #tpu.memory_space<vmem>>, vector<8x16xf32>
      tpu.vector_store %arg10[%c0_66, %c0_67], %194 {strides = array<i32>} : memref<8x16xf32, #tpu.memory_space<vmem>>, vector<8x16xf32>,
    } else {
    }
    %c0 = arith.constant 0 : index
    %c0_1 = arith.constant 0 : index
    %3 = vector.load %arg2[%c0, %c0_1] : memref<32x16xbf16, #tpu.memory_space<vmem>>, vector<32x16xbf16>
    %c0_2 = arith.constant 0 : index
    %c0_3 = arith.constant 0 : index
    %c0_4 = arith.constant 0 : index
    %4 = vector.load %arg4[%c0_2, %c0_3, %c0_4] : memref<1x16x48xbf16, #tpu.memory_space<vmem>>, vector<1x16x48xbf16>
    %5 = vector.shape_cast %4 : vector<1x16x48xbf16> to vector<16x48xbf16>
    %cst = arith.constant dense<0.000000e+00> : vector<32x48xf32>
    %6 = tpu.matmul %3, %5, %cst {dimension_numbers = #tpu.dot_dimension_numbers<[1], [0], [0], [1], [0, 0, 1, 1], [], []>} : vector<32x16xbf16>, vector<16x48xbf16>, vector<32x48xf32> -> vector<32x48xf32>
    %c0_5 = arith.constant 0 : index
    %c0_6 = arith.constant 0 : index
    %c0_7 = arith.constant 0 : index
    %7 = vector.load %arg6[%c0_5, %c0_6, %c0_7] : memref<1x1x48xf32, #tpu.memory_space<vmem>>, vector<1x1x48xf32>
    %8 = vector.shape_cast %7 : vector<1x1x48xf32> to vector<1x48xf32>
    %9 = vector.broadcast %8 : vector<1x48xf32> to vector<32x48xf32>
    %10 = arith.addf %6, %9 : vector<32x48xf32>
    %c0_8 = arith.constant 0 : index
    %c0_9 = arith.constant 0 : index
    %11 = vector.load %arg11[%c0_8, %c0_9] : memref<32x48xf32, #tpu.memory_space<vmem>>, vector<32x48xf32>
    tpu.vector_store %arg11[%c0_8, %c0_9], %10 {strides = array<i32>} : memref<32x48xf32, #tpu.memory_space<vmem>>, vector<32x48xf32>,
    %c0_10 = arith.constant 0 : index
    %c0_11 = arith.constant 0 : index
    %c0_12 = arith.constant 0 : index
    %12 = vector.load %arg5[%c0_10, %c0_11, %c0_12] : memref<1x16x48xbf16, #tpu.memory_space<vmem>>, vector<1x16x48xbf16>
    %13 = vector.shape_cast %12 : vector<1x16x48xbf16> to vector<16x48xbf16>
    %c0_13 = arith.constant 0 : index
    %c0_14 = arith.constant 0 : index
    %c0_15 = arith.constant 0 : index
    %14 = vector.load %arg7[%c0_13, %c0_14, %c0_15] : memref<1x1x16xf32, #tpu.memory_space<vmem>>, vector<1x1x16xf32>
    %15 = vector.shape_cast %14 : vector<1x1x16xf32> to vector<1x16xf32>
    %c0_16 = arith.constant 0 : index
    %c0_17 = arith.constant 0 : index
    %16 = vector.load %arg10[%c0_16, %c0_17] : memref<8x16xf32, #tpu.memory_space<vmem>>, vector<8x16xf32>
    %c0_i32_18 = arith.constant 0 : i32
    %c2_i32 = arith.constant 2 : i32
    %17 = arith.muli %c2_i32, %c0_i32_18 : i32
    %c3_i32 = arith.constant 3 : i32
    %18 = arith.subi %c3_i32, %17 : i32
    %19 = arith.muli %arg0, %18 : i32
    %20 = arith.addi %c0_i32_18, %19 : i32
    %c8_i32 = arith.constant 8 : i32
    %21 = arith.muli %20, %c8_i32 : i32
    %22 = tpu.assume_multiple %21, 8 : i32
    %23 = arith.index_cast %22 : i32 to index
    %c0_19 = arith.constant 0 : index
    %24 = vector.load %arg11[%23, %c0_19] : memref<32x48xf32, #tpu.memory_space<vmem>>, vector<8x48xf32>
    %25 = arith.truncf %16 : vector<8x16xf32> to vector<8x16xbf16>
    %cst_20 = arith.constant dense<0.000000e+00> : vector<8x48xf32>
    %26 = tpu.matmul %25, %13, %cst_20 {dimension_numbers = #tpu.dot_dimension_numbers<[1], [0], [0], [1], [0, 0, 1, 1], [], []>} : vector<8x16xbf16>, vector<16x48xbf16>, vector<8x48xf32> -> vector<8x48xf32>
    %27 = vector.extract_strided_slice %24 {offsets = [0, 0], sizes = [8, 16], strides = [1, 1]} : vector<8x48xf32> to vector<8x16xf32>
    %28 = vector.extract_strided_slice %26 {offsets = [0, 0], sizes = [8, 16], strides = [1, 1]} : vector<8x48xf32> to vector<8x16xf32>
    %29 = arith.addf %27, %28 : vector<8x16xf32>
    %30 = arith.negf %29 : vector<8x16xf32>
    %31 = math.exp %30 : vector<8x16xf32>
    %cst_21 = arith.constant 1.000000e+00 : f32
    %32 = vector.broadcast %cst_21 : f32 to vector<8x16xf32>
    %33 = arith.addf %32, %31 : vector<8x16xf32>
    %34 = arith.divf %32, %33 : vector<8x16xf32>
    %35 = vector.extract_strided_slice %24 {offsets = [0, 16], sizes = [8, 16], strides = [1, 1]} : vector<8x48xf32> to vector<8x16xf32>
    %36 = vector.extract_strided_slice %26 {offsets = [0, 16], sizes = [8, 16], strides = [1, 1]} : vector<8x48xf32> to vector<8x16xf32>
    %37 = arith.addf %35, %36 : vector<8x16xf32>
    %38 = arith.negf %37 : vector<8x16xf32>
    %39 = math.exp %38 : vector<8x16xf32>
    %cst_22 = arith.constant 1.000000e+00 : f32
    %40 = vector.broadcast %cst_22 : f32 to vector<8x16xf32>
    %41 = arith.addf %40, %39 : vector<8x16xf32>
    %42 = arith.divf %40, %41 : vector<8x16xf32>
    %43 = vector.extract_strided_slice %24 {offsets = [0, 32], sizes = [8, 16], strides = [1, 1]} : vector<8x48xf32> to vector<8x16xf32>
    %44 = vector.extract_strided_slice %26 {offsets = [0, 32], sizes = [8, 16], strides = [1, 1]} : vector<8x48xf32> to vector<8x16xf32>
    %45 = vector.broadcast %15 : vector<1x16xf32> to vector<8x16xf32>
    %46 = arith.addf %44, %45 : vector<8x16xf32>
    %47 = arith.mulf %34, %46 : vector<8x16xf32>
    %48 = arith.addf %43, %47 : vector<8x16xf32>
    %49 = math.tanh %48 : vector<8x16xf32>
    %cst_23 = arith.constant 1.000000e+00 : f32
    %50 = vector.broadcast %cst_23 : f32 to vector<8x16xf32>
    %51 = arith.subf %50, %42 : vector<8x16xf32>
    %52 = arith.mulf %51, %49 : vector<8x16xf32>
    %53 = arith.mulf %42, %16 : vector<8x16xf32>
    %54 = arith.addf %52, %53 : vector<8x16xf32>
    %55 = arith.truncf %54 : vector<8x16xf32> to vector<8x16xbf16>
    %56 = arith.index_cast %20 : i32 to index
    %c0_24 = arith.constant 0 : index
    %c0_25 = arith.constant 0 : index
    %57 = vector.load %arg8[%56, %c0_24, %c0_25] : memref<4x8x16xbf16, #tpu.memory_space<vmem>>, vector<1x8x16xbf16>
    %58 = vector.shape_cast %57 : vector<1x8x16xbf16> to vector<8x16xbf16>
    %59 = vector.shape_cast %55 : vector<8x16xbf16> to vector<1x8x16xbf16>
    tpu.vector_store %arg8[%56, %c0_24, %c0_25], %59 {strides = array<i32>} : memref<4x8x16xbf16, #tpu.memory_space<vmem>>, vector<1x8x16xbf16>,
    %c1_i32 = arith.constant 1 : i32
    %c2_i32_26 = arith.constant 2 : i32
    %60 = arith.muli %c2_i32_26, %c1_i32 : i32
    %c3_i32_27 = arith.constant 3 : i32
    %61 = arith.subi %c3_i32_27, %60 : i32
    %62 = arith.muli %arg0, %61 : i32
    %63 = arith.addi %c1_i32, %62 : i32
    %c8_i32_28 = arith.constant 8 : i32
    %64 = arith.muli %63, %c8_i32_28 : i32
    %65 = tpu.assume_multiple %64, 8 : i32
    %66 = arith.index_cast %65 : i32 to index
    %c0_29 = arith.constant 0 : index
    %67 = vector.load %arg11[%66, %c0_29] : memref<32x48xf32, #tpu.memory_space<vmem>>, vector<8x48xf32>
    %68 = arith.truncf %54 : vector<8x16xf32> to vector<8x16xbf16>
    %cst_30 = arith.constant dense<0.000000e+00> : vector<8x48xf32>
    %69 = tpu.matmul %68, %13, %cst_30 {dimension_numbers = #tpu.dot_dimension_numbers<[1], [0], [0], [1], [0, 0, 1, 1], [], []>} : vector<8x16xbf16>, vector<16x48xbf16>, vector<8x48xf32> -> vector<8x48xf32>
    %70 = vector.extract_strided_slice %67 {offsets = [0, 0], sizes = [8, 16], strides = [1, 1]} : vector<8x48xf32> to vector<8x16xf32>
    %71 = vector.extract_strided_slice %69 {offsets = [0, 0], sizes = [8, 16], strides = [1, 1]} : vector<8x48xf32> to vector<8x16xf32>
    %72 = arith.addf %70, %71 : vector<8x16xf32>
    %73 = arith.negf %72 : vector<8x16xf32>
    %74 = math.exp %73 : vector<8x16xf32>
    %cst_31 = arith.constant 1.000000e+00 : f32
    %75 = vector.broadcast %cst_31 : f32 to vector<8x16xf32>
    %76 = arith.addf %75, %74 : vector<8x16xf32>
    %77 = arith.divf %75, %76 : vector<8x16xf32>
    %78 = vector.extract_strided_slice %67 {offsets = [0, 16], sizes = [8, 16], strides = [1, 1]} : vector<8x48xf32> to vector<8x16xf32>
    %79 = vector.extract_strided_slice %69 {offsets = [0, 16], sizes = [8, 16], strides = [1, 1]} : vector<8x48xf32> to vector<8x16xf32>
    %80 = arith.addf %78, %79 : vector<8x16xf32>
    %81 = arith.negf %80 : vector<8x16xf32>
    %82 = math.exp %81 : vector<8x16xf32>
    %cst_32 = arith.constant 1.000000e+00 : f32
    %83 = vector.broadcast %cst_32 : f32 to vector<8x16xf32>
    %84 = arith.addf %83, %82 : vector<8x16xf32>
    %85 = arith.divf %83, %84 : vector<8x16xf32>
    %86 = vector.extract_strided_slice %67 {offsets = [0, 32], sizes = [8, 16], strides = [1, 1]} : vector<8x48xf32> to vector<8x16xf32>
    %87 = vector.extract_strided_slice %69 {offsets = [0, 32], sizes = [8, 16], strides = [1, 1]} : vector<8x48xf32> to vector<8x16xf32>
    %88 = vector.broadcast %15 : vector<1x16xf32> to vector<8x16xf32>
    %89 = arith.addf %87, %88 : vector<8x16xf32>
    %90 = arith.mulf %77, %89 : vector<8x16xf32>
    %91 = arith.addf %86, %90 : vector<8x16xf32>
    %92 = math.tanh %91 : vector<8x16xf32>
    %cst_33 = arith.constant 1.000000e+00 : f32
    %93 = vector.broadcast %cst_33 : f32 to vector<8x16xf32>
    %94 = arith.subf %93, %85 : vector<8x16xf32>
    %95 = arith.mulf %94, %92 : vector<8x16xf32>
    %96 = arith.mulf %85, %54 : vector<8x16xf32>
    %97 = arith.addf %95, %96 : vector<8x16xf32>
    %98 = arith.truncf %97 : vector<8x16xf32> to vector<8x16xbf16>
    %99 = arith.index_cast %63 : i32 to index
    %c0_34 = arith.constant 0 : index
    %c0_35 = arith.constant 0 : index
    %100 = vector.load %arg8[%99, %c0_34, %c0_35] : memref<4x8x16xbf16, #tpu.memory_space<vmem>>, vector<1x8x16xbf16>
    %101 = vector.shape_cast %100 : vector<1x8x16xbf16> to vector<8x16xbf16>
    %102 = vector.shape_cast %98 : vector<8x16xbf16> to vector<1x8x16xbf16>
    tpu.vector_store %arg8[%99, %c0_34, %c0_35], %102 {strides = array<i32>} : memref<4x8x16xbf16, #tpu.memory_space<vmem>>, vector<1x8x16xbf16>,
    %c2_i32_36 = arith.constant 2 : i32
    %c2_i32_37 = arith.constant 2 : i32
    %103 = arith.muli %c2_i32_37, %c2_i32_36 : i32
    %c3_i32_38 = arith.constant 3 : i32
    %104 = arith.subi %c3_i32_38, %103 : i32
    %105 = arith.muli %arg0, %104 : i32
    %106 = arith.addi %c2_i32_36, %105 : i32
    %c8_i32_39 = arith.constant 8 : i32
    %107 = arith.muli %106, %c8_i32_39 : i32
    %108 = tpu.assume_multiple %107, 8 : i32
    %109 = arith.index_cast %108 : i32 to index
    %c0_40 = arith.constant 0 : index
    %110 = vector.load %arg11[%109, %c0_40] : memref<32x48xf32, #tpu.memory_space<vmem>>, vector<8x48xf32>
    %111 = arith.truncf %97 : vector<8x16xf32> to vector<8x16xbf16>
    %cst_41 = arith.constant dense<0.000000e+00> : vector<8x48xf32>
    %112 = tpu.matmul %111, %13, %cst_41 {dimension_numbers = #tpu.dot_dimension_numbers<[1], [0], [0], [1], [0, 0, 1, 1], [], []>} : vector<8x16xbf16>, vector<16x48xbf16>, vector<8x48xf32> -> vector<8x48xf32>
    %113 = vector.extract_strided_slice %110 {offsets = [0, 0], sizes = [8, 16], strides = [1, 1]} : vector<8x48xf32> to vector<8x16xf32>
    %114 = vector.extract_strided_slice %112 {offsets = [0, 0], sizes = [8, 16], strides = [1, 1]} : vector<8x48xf32> to vector<8x16xf32>
    %115 = arith.addf %113, %114 : vector<8x16xf32>
    %116 = arith.negf %115 : vector<8x16xf32>
    %117 = math.exp %116 : vector<8x16xf32>
    %cst_42 = arith.constant 1.000000e+00 : f32
    %118 = vector.broadcast %cst_42 : f32 to vector<8x16xf32>
    %119 = arith.addf %118, %117 : vector<8x16xf32>
    %120 = arith.divf %118, %119 : vector<8x16xf32>
    %121 = vector.extract_strided_slice %110 {offsets = [0, 16], sizes = [8, 16], strides = [1, 1]} : vector<8x48xf32> to vector<8x16xf32>
    %122 = vector.extract_strided_slice %112 {offsets = [0, 16], sizes = [8, 16], strides = [1, 1]} : vector<8x48xf32> to vector<8x16xf32>
    %123 = arith.addf %121, %122 : vector<8x16xf32>
    %124 = arith.negf %123 : vector<8x16xf32>
    %125 = math.exp %124 : vector<8x16xf32>
    %cst_43 = arith.constant 1.000000e+00 : f32
    %126 = vector.broadcast %cst_43 : f32 to vector<8x16xf32>
    %127 = arith.addf %126, %125 : vector<8x16xf32>
    %128 = arith.divf %126, %127 : vector<8x16xf32>
    %129 = vector.extract_strided_slice %110 {offsets = [0, 32], sizes = [8, 16], strides = [1, 1]} : vector<8x48xf32> to vector<8x16xf32>
    %130 = vector.extract_strided_slice %112 {offsets = [0, 32], sizes = [8, 16], strides = [1, 1]} : vector<8x48xf32> to vector<8x16xf32>
    %131 = vector.broadcast %15 : vector<1x16xf32> to vector<8x16xf32>
    %132 = arith.addf %130, %131 : vector<8x16xf32>
    %133 = arith.mulf %120, %132 : vector<8x16xf32>
    %134 = arith.addf %129, %133 : vector<8x16xf32>
    %135 = math.tanh %134 : vector<8x16xf32>
    %cst_44 = arith.constant 1.000000e+00 : f32
    %136 = vector.broadcast %cst_44 : f32 to vector<8x16xf32>
    %137 = arith.subf %136, %128 : vector<8x16xf32>
    %138 = arith.mulf %137, %135 : vector<8x16xf32>
    %139 = arith.mulf %128, %97 : vector<8x16xf32>
    %140 = arith.addf %138, %139 : vector<8x16xf32>
    %141 = arith.truncf %140 : vector<8x16xf32> to vector<8x16xbf16>
    %142 = arith.index_cast %106 : i32 to index
    %c0_45 = arith.constant 0 : index
    %c0_46 = arith.constant 0 : index
    %143 = vector.load %arg8[%142, %c0_45, %c0_46] : memref<4x8x16xbf16, #tpu.memory_space<vmem>>, vector<1x8x16xbf16>
    %144 = vector.shape_cast %143 : vector<1x8x16xbf16> to vector<8x16xbf16>
    %145 = vector.shape_cast %141 : vector<8x16xbf16> to vector<1x8x16xbf16>
    tpu.vector_store %arg8[%142, %c0_45, %c0_46], %145 {strides = array<i32>} : memref<4x8x16xbf16, #tpu.memory_space<vmem>>, vector<1x8x16xbf16>,
    %c3_i32_47 = arith.constant 3 : i32
    %c2_i32_48 = arith.constant 2 : i32
    %146 = arith.muli %c2_i32_48, %c3_i32_47 : i32
    %c3_i32_49 = arith.constant 3 : i32
    %147 = arith.subi %c3_i32_49, %146 : i32
    %148 = arith.muli %arg0, %147 : i32
    %149 = arith.addi %c3_i32_47, %148 : i32
    %c8_i32_50 = arith.constant 8 : i32
    %150 = arith.muli %149, %c8_i32_50 : i32
    %151 = tpu.assume_multiple %150, 8 : i32
    %152 = arith.index_cast %151 : i32 to index
    %c0_51 = arith.constant 0 : index
    %153 = vector.load %arg11[%152, %c0_51] : memref<32x48xf32, #tpu.memory_space<vmem>>, vector<8x48xf32>
    %154 = arith.truncf %140 : vector<8x16xf32> to vector<8x16xbf16>
    %cst_52 = arith.constant dense<0.000000e+00> : vector<8x48xf32>
    %155 = tpu.matmul %154, %13, %cst_52 {dimension_numbers = #tpu.dot_dimension_numbers<[1], [0], [0], [1], [0, 0, 1, 1], [], []>} : vector<8x16xbf16>, vector<16x48xbf16>, vector<8x48xf32> -> vector<8x48xf32>
    %156 = vector.extract_strided_slice %153 {offsets = [0, 0], sizes = [8, 16], strides = [1, 1]} : vector<8x48xf32> to vector<8x16xf32>
    %157 = vector.extract_strided_slice %155 {offsets = [0, 0], sizes = [8, 16], strides = [1, 1]} : vector<8x48xf32> to vector<8x16xf32>
    %158 = arith.addf %156, %157 : vector<8x16xf32>
    %159 = arith.negf %158 : vector<8x16xf32>
    %160 = math.exp %159 : vector<8x16xf32>
    %cst_53 = arith.constant 1.000000e+00 : f32
    %161 = vector.broadcast %cst_53 : f32 to vector<8x16xf32>
    %162 = arith.addf %161, %160 : vector<8x16xf32>
    %163 = arith.divf %161, %162 : vector<8x16xf32>
    %164 = vector.extract_strided_slice %153 {offsets = [0, 16], sizes = [8, 16], strides = [1, 1]} : vector<8x48xf32> to vector<8x16xf32>
    %165 = vector.extract_strided_slice %155 {offsets = [0, 16], sizes = [8, 16], strides = [1, 1]} : vector<8x48xf32> to vector<8x16xf32>
    %166 = arith.addf %164, %165 : vector<8x16xf32>
    %167 = arith.negf %166 : vector<8x16xf32>
    %168 = math.exp %167 : vector<8x16xf32>
    %cst_54 = arith.constant 1.000000e+00 : f32
    %169 = vector.broadcast %cst_54 : f32 to vector<8x16xf32>
    %170 = arith.addf %169, %168 : vector<8x16xf32>
    %171 = arith.divf %169, %170 : vector<8x16xf32>
    %172 = vector.extract_strided_slice %153 {offsets = [0, 32], sizes = [8, 16], strides = [1, 1]} : vector<8x48xf32> to vector<8x16xf32>
    %173 = vector.extract_strided_slice %155 {offsets = [0, 32], sizes = [8, 16], strides = [1, 1]} : vector<8x48xf32> to vector<8x16xf32>
    %174 = vector.broadcast %15 : vector<1x16xf32> to vector<8x16xf32>
    %175 = arith.addf %173, %174 : vector<8x16xf32>
    %176 = arith.mulf %163, %175 : vector<8x16xf32>
    %177 = arith.addf %172, %176 : vector<8x16xf32>
    %178 = math.tanh %177 : vector<8x16xf32>
    %cst_55 = arith.constant 1.000000e+00 : f32
    %179 = vector.broadcast %cst_55 : f32 to vector<8x16xf32>
    %180 = arith.subf %179, %171 : vector<8x16xf32>
    %181 = arith.mulf %180, %178 : vector<8x16xf32>
    %182 = arith.mulf %171, %140 : vector<8x16xf32>
    %183 = arith.addf %181, %182 : vector<8x16xf32>
    %184 = arith.truncf %183 : vector<8x16xf32> to vector<8x16xbf16>
    %185 = arith.index_cast %149 : i32 to index
    %c0_56 = arith.constant 0 : index
    %c0_57 = arith.constant 0 : index
    %186 = vector.load %arg8[%185, %c0_56, %c0_57] : memref<4x8x16xbf16, #tpu.memory_space<vmem>>, vector<1x8x16xbf16>
    %187 = vector.shape_cast %186 : vector<1x8x16xbf16> to vector<8x16xbf16>
    %188 = vector.shape_cast %184 : vector<8x16xbf16> to vector<1x8x16xbf16>
    tpu.vector_store %arg8[%185, %c0_56, %c0_57], %188 {strides = array<i32>} : memref<4x8x16xbf16, #tpu.memory_space<vmem>>, vector<1x8x16xbf16>,
    %c4_i32 = arith.constant 4 : i32
    %c0_58 = arith.constant 0 : index
    %c0_59 = arith.constant 0 : index
    %189 = vector.load %arg10[%c0_58, %c0_59] : memref<8x16xf32, #tpu.memory_space<vmem>>, vector<8x16xf32>
    tpu.vector_store %arg10[%c0_58, %c0_59], %183 {strides = array<i32>} : memref<8x16xf32, #tpu.memory_space<vmem>>, vector<8x16xf32>,
    %c0_60 = arith.constant 0 : index
    %c0_61 = arith.constant 0 : index
    %c0_62 = arith.constant 0 : index
    %190 = vector.load %arg9[%c0_60, %c0_61, %c0_62] : memref<1x8x16xf32, #tpu.memory_space<vmem>>, vector<1x8x16xf32>
    %191 = vector.shape_cast %190 : vector<1x8x16xf32> to vector<8x16xf32>
    %192 = vector.shape_cast %183 : vector<8x16xf32> to vector<1x8x16xf32>
    tpu.vector_store %arg9[%c0_60, %c0_61, %c0_62], %192 {strides = array<i32>} : memref<1x8x16xf32, #tpu.memory_space<vmem>>, vector<1x8x16xf32>,
    return
  }
  func.func @transform_0(%arg0: i32, %arg1: i32) -> (i32, i32) {
    %c2_i32 = arith.constant 2 : i32
    %0 = arith.muli %c2_i32, %arg1 : i32
    %c1_i32 = arith.constant 1 : i32
    %1 = arith.subi %c1_i32, %0 : i32
    %2 = arith.muli %arg0, %1 : i32
    %3 = arith.addi %arg1, %2 : i32
    %c0_i32 = arith.constant 0 : i32
    %c0_i32_0 = arith.constant 0 : i32
    return %3, %c0_i32 : i32, i32
  }
  func.func @transform_1(%arg0: i32, %arg1: i32) -> (i32, i32, i32) {
    %c0_i32 = arith.constant 0 : i32
    %c0_i32_0 = arith.constant 0 : i32
    %c0_i32_1 = arith.constant 0 : i32
    return %arg0, %c0_i32, %c0_i32_0 : i32, i32, i32
  }
  func.func @transform_2(%arg0: i32, %arg1: i32) -> (i32, i32, i32) {
    %c0_i32 = arith.constant 0 : i32
    %c0_i32_0 = arith.constant 0 : i32
    %c0_i32_1 = arith.constant 0 : i32
    return %arg0, %c0_i32, %c0_i32_0 : i32, i32, i32
  }
  func.func @transform_3(%arg0: i32, %arg1: i32) -> (i32, i32, i32) {
    %c0_i32 = arith.constant 0 : i32
    %c0_i32_0 = arith.constant 0 : i32
    %c0_i32_1 = arith.constant 0 : i32
    return %arg0, %c0_i32, %c0_i32_0 : i32, i32, i32
  }
  func.func @transform_4(%arg0: i32, %arg1: i32) -> (i32, i32, i32) {
    %c0_i32 = arith.constant 0 : i32
    %c0_i32_0 = arith.constant 0 : i32
    %c0_i32_1 = arith.constant 0 : i32
    return %arg0, %c0_i32, %c0_i32_0 : i32, i32, i32
  }
  func.func @transform_5(%arg0: i32, %arg1: i32) -> (i32, i32, i32) {
    %c0_i32 = arith.constant 0 : i32
    %c0_i32_0 = arith.constant 0 : i32
    %c0_i32_1 = arith.constant 0 : i32
    return %arg0, %c0_i32, %c0_i32_0 : i32, i32, i32
  }
  func.func @transform_6(%arg0: i32, %arg1: i32) -> (i32, i32, i32) {
    %c2_i32 = arith.constant 2 : i32
    %0 = arith.muli %arg0, %c2_i32 : i32
    %c2_i32_0 = arith.constant 2 : i32
    %1 = arith.muli %c2_i32_0, %arg1 : i32
    %c1_i32 = arith.constant 1 : i32
    %2 = arith.subi %c1_i32, %1 : i32
    %3 = arith.muli %arg0, %2 : i32
    %4 = arith.addi %arg1, %3 : i32
    %5 = arith.addi %0, %4 : i32
    %c0_i32 = arith.constant 0 : i32
    %c0_i32_1 = arith.constant 0 : i32
    %c0_i32_2 = arith.constant 0 : i32
    return %5, %c0_i32, %c0_i32_1 : i32, i32, i32
  }
  func.func @transform_7(%arg0: i32, %arg1: i32) -> (i32, i32, i32) {
    %c0_i32 = arith.constant 0 : i32
    %c0_i32_0 = arith.constant 0 : i32
    %c0_i32_1 = arith.constant 0 : i32
    return %arg0, %c0_i32, %c0_i32_0 : i32, i32, i32
  }
}

module attributes {stable_mosaic.version = 11 : i64} {
  func.func @gru_kernel(%arg0: i32, %arg1: i32, %arg2: memref<24x16xbf16, #tpu.memory_space<vmem>>, %arg3: memref<1x8x32xf32, #tpu.memory_space<vmem>>, %arg4: memref<1x16x96xbf16, #tpu.memory_space<vmem>>, %arg5: memref<1x32x96xbf16, #tpu.memory_space<vmem>>, %arg6: memref<1x1x96xf32, #tpu.memory_space<vmem>>, %arg7: memref<1x1x32xf32, #tpu.memory_space<vmem>>, %arg8: memref<3x8x32xbf16, #tpu.memory_space<vmem>>, %arg9: memref<1x8x32xf32, #tpu.memory_space<vmem>>, %arg10: memref<8x32xf32, #tpu.memory_space<vmem>>, %arg11: memref<24x96xf32, #tpu.memory_space<vmem>>) attributes {dimension_semantics = [#tpu.dimension_semantics<parallel>, #tpu.dimension_semantics<arbitrary>], iteration_bounds = array<i64: 1, 2>, scalar_prefetch = 0 : i64, scratch_operands = 2 : i64, tpu.core_type = #tpu.core_type<tc>, window_params = [{transform_indices = @transform_0, window_bounds = array<i64: 24, 16>}, {transform_indices = @transform_1, window_bounds = array<i64: 1, 8, 32>}, {transform_indices = @transform_2, window_bounds = array<i64: 1, 16, 96>}, {transform_indices = @transform_3, window_bounds = array<i64: 1, 32, 96>}, {transform_indices = @transform_4, window_bounds = array<i64: 1, 1, 96>}, {transform_indices = @transform_5, window_bounds = array<i64: 1, 1, 32>}, {transform_indices = @transform_6, window_bounds = array<i64: 3, 8, 32>}, {transform_indices = @transform_7, window_bounds = array<i64: 1, 8, 32>}]} {
    %c0_i32 = arith.constant 0 : i32
    %0 = arith.cmpi eq, %arg1, %c0_i32 : i32
    %1 = arith.extui %0 : i1 to i32
    %c0_i32_0 = arith.constant 0 : i32
    %2 = arith.cmpi ne, %1, %c0_i32_0 : i32
    scf.if %2 {
      %c0_53 = arith.constant 0 : index
      %c0_54 = arith.constant 0 : index
      %c0_55 = arith.constant 0 : index
      %150 = vector.load %arg3[%c0_53, %c0_54, %c0_55] : memref<1x8x32xf32, #tpu.memory_space<vmem>>, vector<1x8x32xf32>
      %151 = vector.shape_cast %150 : vector<1x8x32xf32> to vector<8x32xf32>
      %c0_56 = arith.constant 0 : index
      %c0_57 = arith.constant 0 : index
      %152 = vector.load %arg10[%c0_56, %c0_57] : memref<8x32xf32, #tpu.memory_space<vmem>>, vector<8x32xf32>
      tpu.vector_store %arg10[%c0_56, %c0_57], %151 {strides = array<i32>} : memref<8x32xf32, #tpu.memory_space<vmem>>, vector<8x32xf32>,
    } else {
    }
    %c0 = arith.constant 0 : index
    %c0_1 = arith.constant 0 : index
    %3 = vector.load %arg2[%c0, %c0_1] : memref<24x16xbf16, #tpu.memory_space<vmem>>, vector<24x16xbf16>
    %c0_2 = arith.constant 0 : index
    %c0_3 = arith.constant 0 : index
    %c0_4 = arith.constant 0 : index
    %4 = vector.load %arg4[%c0_2, %c0_3, %c0_4] : memref<1x16x96xbf16, #tpu.memory_space<vmem>>, vector<1x16x96xbf16>
    %5 = vector.shape_cast %4 : vector<1x16x96xbf16> to vector<16x96xbf16>
    %cst = arith.constant dense<0.000000e+00> : vector<24x96xf32>
    %6 = tpu.matmul %3, %5, %cst {dimension_numbers = #tpu.dot_dimension_numbers<[1], [0], [0], [1], [0, 0, 1, 1], [], []>} : vector<24x16xbf16>, vector<16x96xbf16>, vector<24x96xf32> -> vector<24x96xf32>
    %c0_5 = arith.constant 0 : index
    %c0_6 = arith.constant 0 : index
    %c0_7 = arith.constant 0 : index
    %7 = vector.load %arg6[%c0_5, %c0_6, %c0_7] : memref<1x1x96xf32, #tpu.memory_space<vmem>>, vector<1x1x96xf32>
    %8 = vector.shape_cast %7 : vector<1x1x96xf32> to vector<1x96xf32>
    %9 = vector.broadcast %8 : vector<1x96xf32> to vector<24x96xf32>
    %10 = arith.addf %6, %9 : vector<24x96xf32>
    %c0_8 = arith.constant 0 : index
    %c0_9 = arith.constant 0 : index
    %11 = vector.load %arg11[%c0_8, %c0_9] : memref<24x96xf32, #tpu.memory_space<vmem>>, vector<24x96xf32>
    tpu.vector_store %arg11[%c0_8, %c0_9], %10 {strides = array<i32>} : memref<24x96xf32, #tpu.memory_space<vmem>>, vector<24x96xf32>,
    %c0_10 = arith.constant 0 : index
    %c0_11 = arith.constant 0 : index
    %c0_12 = arith.constant 0 : index
    %12 = vector.load %arg5[%c0_10, %c0_11, %c0_12] : memref<1x32x96xbf16, #tpu.memory_space<vmem>>, vector<1x32x96xbf16>
    %13 = vector.shape_cast %12 : vector<1x32x96xbf16> to vector<32x96xbf16>
    %c0_13 = arith.constant 0 : index
    %c0_14 = arith.constant 0 : index
    %c0_15 = arith.constant 0 : index
    %14 = vector.load %arg7[%c0_13, %c0_14, %c0_15] : memref<1x1x32xf32, #tpu.memory_space<vmem>>, vector<1x1x32xf32>
    %15 = vector.shape_cast %14 : vector<1x1x32xf32> to vector<1x32xf32>
    %c0_16 = arith.constant 0 : index
    %c0_17 = arith.constant 0 : index
    %16 = vector.load %arg10[%c0_16, %c0_17] : memref<8x32xf32, #tpu.memory_space<vmem>>, vector<8x32xf32>
    %c0_i32_18 = arith.constant 0 : i32
    %c2_i32 = arith.constant 2 : i32
    %17 = arith.muli %c2_i32, %c0_i32_18 : i32
    %c2_i32_19 = arith.constant 2 : i32
    %18 = arith.subi %c2_i32_19, %17 : i32
    %19 = arith.muli %arg0, %18 : i32
    %20 = arith.addi %c0_i32_18, %19 : i32
    %c8_i32 = arith.constant 8 : i32
    %21 = arith.muli %20, %c8_i32 : i32
    %22 = tpu.assume_multiple %21, 8 : i32
    %23 = arith.index_cast %22 : i32 to index
    %c0_20 = arith.constant 0 : index
    %24 = vector.load %arg11[%23, %c0_20] : memref<24x96xf32, #tpu.memory_space<vmem>>, vector<8x96xf32>
    %25 = arith.truncf %16 : vector<8x32xf32> to vector<8x32xbf16>
    %cst_21 = arith.constant dense<0.000000e+00> : vector<8x96xf32>
    %26 = tpu.matmul %25, %13, %cst_21 {dimension_numbers = #tpu.dot_dimension_numbers<[1], [0], [0], [1], [0, 0, 1, 1], [], []>} : vector<8x32xbf16>, vector<32x96xbf16>, vector<8x96xf32> -> vector<8x96xf32>
    %27 = vector.extract_strided_slice %24 {offsets = [0, 0], sizes = [8, 32], strides = [1, 1]} : vector<8x96xf32> to vector<8x32xf32>
    %28 = vector.extract_strided_slice %26 {offsets = [0, 0], sizes = [8, 32], strides = [1, 1]} : vector<8x96xf32> to vector<8x32xf32>
    %29 = arith.addf %27, %28 : vector<8x32xf32>
    %30 = arith.negf %29 : vector<8x32xf32>
    %31 = math.exp %30 : vector<8x32xf32>
    %cst_22 = arith.constant 1.000000e+00 : f32
    %32 = vector.broadcast %cst_22 : f32 to vector<8x32xf32>
    %33 = arith.addf %32, %31 : vector<8x32xf32>
    %34 = arith.divf %32, %33 : vector<8x32xf32>
    %35 = vector.extract_strided_slice %24 {offsets = [0, 32], sizes = [8, 32], strides = [1, 1]} : vector<8x96xf32> to vector<8x32xf32>
    %36 = vector.extract_strided_slice %26 {offsets = [0, 32], sizes = [8, 32], strides = [1, 1]} : vector<8x96xf32> to vector<8x32xf32>
    %37 = arith.addf %35, %36 : vector<8x32xf32>
    %38 = arith.negf %37 : vector<8x32xf32>
    %39 = math.exp %38 : vector<8x32xf32>
    %cst_23 = arith.constant 1.000000e+00 : f32
    %40 = vector.broadcast %cst_23 : f32 to vector<8x32xf32>
    %41 = arith.addf %40, %39 : vector<8x32xf32>
    %42 = arith.divf %40, %41 : vector<8x32xf32>
    %43 = vector.extract_strided_slice %24 {offsets = [0, 64], sizes = [8, 32], strides = [1, 1]} : vector<8x96xf32> to vector<8x32xf32>
    %44 = vector.extract_strided_slice %26 {offsets = [0, 64], sizes = [8, 32], strides = [1, 1]} : vector<8x96xf32> to vector<8x32xf32>
    %45 = vector.broadcast %15 : vector<1x32xf32> to vector<8x32xf32>
    %46 = arith.addf %44, %45 : vector<8x32xf32>
    %47 = arith.mulf %34, %46 : vector<8x32xf32>
    %48 = arith.addf %43, %47 : vector<8x32xf32>
    %49 = math.tanh %48 : vector<8x32xf32>
    %cst_24 = arith.constant 1.000000e+00 : f32
    %50 = vector.broadcast %cst_24 : f32 to vector<8x32xf32>
    %51 = arith.subf %50, %42 : vector<8x32xf32>
    %52 = arith.mulf %51, %49 : vector<8x32xf32>
    %53 = arith.mulf %42, %16 : vector<8x32xf32>
    %54 = arith.addf %52, %53 : vector<8x32xf32>
    %55 = arith.truncf %54 : vector<8x32xf32> to vector<8x32xbf16>
    %56 = arith.index_cast %20 : i32 to index
    %c0_25 = arith.constant 0 : index
    %c0_26 = arith.constant 0 : index
    %57 = vector.load %arg8[%56, %c0_25, %c0_26] : memref<3x8x32xbf16, #tpu.memory_space<vmem>>, vector<1x8x32xbf16>
    %58 = vector.shape_cast %57 : vector<1x8x32xbf16> to vector<8x32xbf16>
    %59 = vector.shape_cast %55 : vector<8x32xbf16> to vector<1x8x32xbf16>
    tpu.vector_store %arg8[%56, %c0_25, %c0_26], %59 {strides = array<i32>} : memref<3x8x32xbf16, #tpu.memory_space<vmem>>, vector<1x8x32xbf16>,
    %c1_i32 = arith.constant 1 : i32
    %c2_i32_27 = arith.constant 2 : i32
    %60 = arith.muli %c2_i32_27, %c1_i32 : i32
    %c2_i32_28 = arith.constant 2 : i32
    %61 = arith.subi %c2_i32_28, %60 : i32
    %62 = arith.muli %arg0, %61 : i32
    %63 = arith.addi %c1_i32, %62 : i32
    %c8_i32_29 = arith.constant 8 : i32
    %64 = arith.muli %63, %c8_i32_29 : i32
    %65 = tpu.assume_multiple %64, 8 : i32
    %66 = arith.index_cast %65 : i32 to index
    %c0_30 = arith.constant 0 : index
    %67 = vector.load %arg11[%66, %c0_30] : memref<24x96xf32, #tpu.memory_space<vmem>>, vector<8x96xf32>
    %68 = arith.truncf %54 : vector<8x32xf32> to vector<8x32xbf16>
    %cst_31 = arith.constant dense<0.000000e+00> : vector<8x96xf32>
    %69 = tpu.matmul %68, %13, %cst_31 {dimension_numbers = #tpu.dot_dimension_numbers<[1], [0], [0], [1], [0, 0, 1, 1], [], []>} : vector<8x32xbf16>, vector<32x96xbf16>, vector<8x96xf32> -> vector<8x96xf32>
    %70 = vector.extract_strided_slice %67 {offsets = [0, 0], sizes = [8, 32], strides = [1, 1]} : vector<8x96xf32> to vector<8x32xf32>
    %71 = vector.extract_strided_slice %69 {offsets = [0, 0], sizes = [8, 32], strides = [1, 1]} : vector<8x96xf32> to vector<8x32xf32>
    %72 = arith.addf %70, %71 : vector<8x32xf32>
    %73 = arith.negf %72 : vector<8x32xf32>
    %74 = math.exp %73 : vector<8x32xf32>
    %cst_32 = arith.constant 1.000000e+00 : f32
    %75 = vector.broadcast %cst_32 : f32 to vector<8x32xf32>
    %76 = arith.addf %75, %74 : vector<8x32xf32>
    %77 = arith.divf %75, %76 : vector<8x32xf32>
    %78 = vector.extract_strided_slice %67 {offsets = [0, 32], sizes = [8, 32], strides = [1, 1]} : vector<8x96xf32> to vector<8x32xf32>
    %79 = vector.extract_strided_slice %69 {offsets = [0, 32], sizes = [8, 32], strides = [1, 1]} : vector<8x96xf32> to vector<8x32xf32>
    %80 = arith.addf %78, %79 : vector<8x32xf32>
    %81 = arith.negf %80 : vector<8x32xf32>
    %82 = math.exp %81 : vector<8x32xf32>
    %cst_33 = arith.constant 1.000000e+00 : f32
    %83 = vector.broadcast %cst_33 : f32 to vector<8x32xf32>
    %84 = arith.addf %83, %82 : vector<8x32xf32>
    %85 = arith.divf %83, %84 : vector<8x32xf32>
    %86 = vector.extract_strided_slice %67 {offsets = [0, 64], sizes = [8, 32], strides = [1, 1]} : vector<8x96xf32> to vector<8x32xf32>
    %87 = vector.extract_strided_slice %69 {offsets = [0, 64], sizes = [8, 32], strides = [1, 1]} : vector<8x96xf32> to vector<8x32xf32>
    %88 = vector.broadcast %15 : vector<1x32xf32> to vector<8x32xf32>
    %89 = arith.addf %87, %88 : vector<8x32xf32>
    %90 = arith.mulf %77, %89 : vector<8x32xf32>
    %91 = arith.addf %86, %90 : vector<8x32xf32>
    %92 = math.tanh %91 : vector<8x32xf32>
    %cst_34 = arith.constant 1.000000e+00 : f32
    %93 = vector.broadcast %cst_34 : f32 to vector<8x32xf32>
    %94 = arith.subf %93, %85 : vector<8x32xf32>
    %95 = arith.mulf %94, %92 : vector<8x32xf32>
    %96 = arith.mulf %85, %54 : vector<8x32xf32>
    %97 = arith.addf %95, %96 : vector<8x32xf32>
    %98 = arith.truncf %97 : vector<8x32xf32> to vector<8x32xbf16>
    %99 = arith.index_cast %63 : i32 to index
    %c0_35 = arith.constant 0 : index
    %c0_36 = arith.constant 0 : index
    %100 = vector.load %arg8[%99, %c0_35, %c0_36] : memref<3x8x32xbf16, #tpu.memory_space<vmem>>, vector<1x8x32xbf16>
    %101 = vector.shape_cast %100 : vector<1x8x32xbf16> to vector<8x32xbf16>
    %102 = vector.shape_cast %98 : vector<8x32xbf16> to vector<1x8x32xbf16>
    tpu.vector_store %arg8[%99, %c0_35, %c0_36], %102 {strides = array<i32>} : memref<3x8x32xbf16, #tpu.memory_space<vmem>>, vector<1x8x32xbf16>,
    %c2_i32_37 = arith.constant 2 : i32
    %c2_i32_38 = arith.constant 2 : i32
    %103 = arith.muli %c2_i32_38, %c2_i32_37 : i32
    %c2_i32_39 = arith.constant 2 : i32
    %104 = arith.subi %c2_i32_39, %103 : i32
    %105 = arith.muli %arg0, %104 : i32
    %106 = arith.addi %c2_i32_37, %105 : i32
    %c8_i32_40 = arith.constant 8 : i32
    %107 = arith.muli %106, %c8_i32_40 : i32
    %108 = tpu.assume_multiple %107, 8 : i32
    %109 = arith.index_cast %108 : i32 to index
    %c0_41 = arith.constant 0 : index
    %110 = vector.load %arg11[%109, %c0_41] : memref<24x96xf32, #tpu.memory_space<vmem>>, vector<8x96xf32>
    %111 = arith.truncf %97 : vector<8x32xf32> to vector<8x32xbf16>
    %cst_42 = arith.constant dense<0.000000e+00> : vector<8x96xf32>
    %112 = tpu.matmul %111, %13, %cst_42 {dimension_numbers = #tpu.dot_dimension_numbers<[1], [0], [0], [1], [0, 0, 1, 1], [], []>} : vector<8x32xbf16>, vector<32x96xbf16>, vector<8x96xf32> -> vector<8x96xf32>
    %113 = vector.extract_strided_slice %110 {offsets = [0, 0], sizes = [8, 32], strides = [1, 1]} : vector<8x96xf32> to vector<8x32xf32>
    %114 = vector.extract_strided_slice %112 {offsets = [0, 0], sizes = [8, 32], strides = [1, 1]} : vector<8x96xf32> to vector<8x32xf32>
    %115 = arith.addf %113, %114 : vector<8x32xf32>
    %116 = arith.negf %115 : vector<8x32xf32>
    %117 = math.exp %116 : vector<8x32xf32>
    %cst_43 = arith.constant 1.000000e+00 : f32
    %118 = vector.broadcast %cst_43 : f32 to vector<8x32xf32>
    %119 = arith.addf %118, %117 : vector<8x32xf32>
    %120 = arith.divf %118, %119 : vector<8x32xf32>
    %121 = vector.extract_strided_slice %110 {offsets = [0, 32], sizes = [8, 32], strides = [1, 1]} : vector<8x96xf32> to vector<8x32xf32>
    %122 = vector.extract_strided_slice %112 {offsets = [0, 32], sizes = [8, 32], strides = [1, 1]} : vector<8x96xf32> to vector<8x32xf32>
    %123 = arith.addf %121, %122 : vector<8x32xf32>
    %124 = arith.negf %123 : vector<8x32xf32>
    %125 = math.exp %124 : vector<8x32xf32>
    %cst_44 = arith.constant 1.000000e+00 : f32
    %126 = vector.broadcast %cst_44 : f32 to vector<8x32xf32>
    %127 = arith.addf %126, %125 : vector<8x32xf32>
    %128 = arith.divf %126, %127 : vector<8x32xf32>
    %129 = vector.extract_strided_slice %110 {offsets = [0, 64], sizes = [8, 32], strides = [1, 1]} : vector<8x96xf32> to vector<8x32xf32>
    %130 = vector.extract_strided_slice %112 {offsets = [0, 64], sizes = [8, 32], strides = [1, 1]} : vector<8x96xf32> to vector<8x32xf32>
    %131 = vector.broadcast %15 : vector<1x32xf32> to vector<8x32xf32>
    %132 = arith.addf %130, %131 : vector<8x32xf32>
    %133 = arith.mulf %120, %132 : vector<8x32xf32>
    %134 = arith.addf %129, %133 : vector<8x32xf32>
    %135 = math.tanh %134 : vector<8x32xf32>
    %cst_45 = arith.constant 1.000000e+00 : f32
    %136 = vector.broadcast %cst_45 : f32 to vector<8x32xf32>
    %137 = arith.subf %136, %128 : vector<8x32xf32>
    %138 = arith.mulf %137, %135 : vector<8x32xf32>
    %139 = arith.mulf %128, %97 : vector<8x32xf32>
    %140 = arith.addf %138, %139 : vector<8x32xf32>
    %141 = arith.truncf %140 : vector<8x32xf32> to vector<8x32xbf16>
    %142 = arith.index_cast %106 : i32 to index
    %c0_46 = arith.constant 0 : index
    %c0_47 = arith.constant 0 : index
    %143 = vector.load %arg8[%142, %c0_46, %c0_47] : memref<3x8x32xbf16, #tpu.memory_space<vmem>>, vector<1x8x32xbf16>
    %144 = vector.shape_cast %143 : vector<1x8x32xbf16> to vector<8x32xbf16>
    %145 = vector.shape_cast %141 : vector<8x32xbf16> to vector<1x8x32xbf16>
    tpu.vector_store %arg8[%142, %c0_46, %c0_47], %145 {strides = array<i32>} : memref<3x8x32xbf16, #tpu.memory_space<vmem>>, vector<1x8x32xbf16>,
    %c3_i32 = arith.constant 3 : i32
    %c0_48 = arith.constant 0 : index
    %c0_49 = arith.constant 0 : index
    %146 = vector.load %arg10[%c0_48, %c0_49] : memref<8x32xf32, #tpu.memory_space<vmem>>, vector<8x32xf32>
    tpu.vector_store %arg10[%c0_48, %c0_49], %140 {strides = array<i32>} : memref<8x32xf32, #tpu.memory_space<vmem>>, vector<8x32xf32>,
    %c0_50 = arith.constant 0 : index
    %c0_51 = arith.constant 0 : index
    %c0_52 = arith.constant 0 : index
    %147 = vector.load %arg9[%c0_50, %c0_51, %c0_52] : memref<1x8x32xf32, #tpu.memory_space<vmem>>, vector<1x8x32xf32>
    %148 = vector.shape_cast %147 : vector<1x8x32xf32> to vector<8x32xf32>
    %149 = vector.shape_cast %140 : vector<8x32xf32> to vector<1x8x32xf32>
    tpu.vector_store %arg9[%c0_50, %c0_51, %c0_52], %149 {strides = array<i32>} : memref<1x8x32xf32, #tpu.memory_space<vmem>>, vector<1x8x32xf32>,
    return
  }
  func.func @transform_0(%arg0: i32, %arg1: i32) -> (i32, i32) {
    %c2_i32 = arith.constant 2 : i32
    %0 = arith.muli %c2_i32, %arg1 : i32
    %c1_i32 = arith.constant 1 : i32
    %1 = arith.subi %c1_i32, %0 : i32
    %2 = arith.muli %arg0, %1 : i32
    %3 = arith.addi %arg1, %2 : i32
    %c0_i32 = arith.constant 0 : i32
    %c0_i32_0 = arith.constant 0 : i32
    return %3, %c0_i32 : i32, i32
  }
  func.func @transform_1(%arg0: i32, %arg1: i32) -> (i32, i32, i32) {
    %c0_i32 = arith.constant 0 : i32
    %c0_i32_0 = arith.constant 0 : i32
    %c0_i32_1 = arith.constant 0 : i32
    return %arg0, %c0_i32, %c0_i32_0 : i32, i32, i32
  }
  func.func @transform_2(%arg0: i32, %arg1: i32) -> (i32, i32, i32) {
    %c0_i32 = arith.constant 0 : i32
    %c0_i32_0 = arith.constant 0 : i32
    %c0_i32_1 = arith.constant 0 : i32
    return %arg0, %c0_i32, %c0_i32_0 : i32, i32, i32
  }
  func.func @transform_3(%arg0: i32, %arg1: i32) -> (i32, i32, i32) {
    %c0_i32 = arith.constant 0 : i32
    %c0_i32_0 = arith.constant 0 : i32
    %c0_i32_1 = arith.constant 0 : i32
    return %arg0, %c0_i32, %c0_i32_0 : i32, i32, i32
  }
  func.func @transform_4(%arg0: i32, %arg1: i32) -> (i32, i32, i32) {
    %c0_i32 = arith.constant 0 : i32
    %c0_i32_0 = arith.constant 0 : i32
    %c0_i32_1 = arith.constant 0 : i32
    return %arg0, %c0_i32, %c0_i32_0 : i32, i32, i32
  }
  func.func @transform_5(%arg0: i32, %arg1: i32) -> (i32, i32, i32) {
    %c0_i32 = arith.constant 0 : i32
    %c0_i32_0 = arith.constant 0 : i32
    %c0_i32_1 = arith.constant 0 : i32
    return %arg0, %c0_i32, %c0_i32_0 : i32, i32, i32
  }
  func.func @transform_6(%arg0: i32, %arg1: i32) -> (i32, i32, i32) {
    %c2_i32 = arith.constant 2 : i32
    %0 = arith.muli %arg0, %c2_i32 : i32
    %c2_i32_0 = arith.constant 2 : i32
    %1 = arith.muli %c2_i32_0, %arg1 : i32
    %c1_i32 = arith.constant 1 : i32
    %2 = arith.subi %c1_i32, %1 : i32
    %3 = arith.muli %arg0, %2 : i32
    %4 = arith.addi %arg1, %3 : i32
    %5 = arith.addi %0, %4 : i32
    %c0_i32 = arith.constant 0 : i32
    %c0_i32_1 = arith.constant 0 : i32
    %c0_i32_2 = arith.constant 0 : i32
    return %5, %c0_i32, %c0_i32_1 : i32, i32, i32
  }
  func.func @transform_7(%arg0: i32, %arg1: i32) -> (i32, i32, i32) {
    %c0_i32 = arith.constant 0 : i32
    %c0_i32_0 = arith.constant 0 : i32
    %c0_i32_1 = arith.constant 0 : i32
    return %arg0, %c0_i32, %c0_i32_0 : i32, i32, i32
  }
}

module attributes {stable_mosaic.version = 11 : i64} {
  func.func @attn_ctx_kernel(%arg0: i32, %arg1: memref<1x8x32xbf16, #tpu.memory_space<vmem>>, %arg2: memref<1x6x32xbf16, #tpu.memory_space<vmem>>, %arg3: memref<1x6x32xbf16, #tpu.memory_space<vmem>>) attributes {dimension_semantics = [#tpu.dimension_semantics<parallel>], iteration_bounds = array<i64: 8>, scalar_prefetch = 0 : i64, scratch_operands = 0 : i64, tpu.core_type = #tpu.core_type<tc>, window_params = [{transform_indices = @transform_0, window_bounds = array<i64: 1, 8, 32>}, {transform_indices = @transform_1, window_bounds = array<i64: 1, 6, 32>}, {transform_indices = @transform_2, window_bounds = array<i64: 1, 6, 32>}]} {
    %c0 = arith.constant 0 : index
    %c0_0 = arith.constant 0 : index
    %c0_1 = arith.constant 0 : index
    %0 = vector.load %arg1[%c0, %c0_0, %c0_1] : memref<1x8x32xbf16, #tpu.memory_space<vmem>>, vector<1x8x32xbf16>
    %1 = vector.shape_cast %0 : vector<1x8x32xbf16> to vector<8x32xbf16>
    %c0_2 = arith.constant 0 : index
    %c0_3 = arith.constant 0 : index
    %c0_4 = arith.constant 0 : index
    %2 = vector.load %arg2[%c0_2, %c0_3, %c0_4] : memref<1x6x32xbf16, #tpu.memory_space<vmem>>, vector<1x6x32xbf16>
    %3 = vector.shape_cast %2 : vector<1x6x32xbf16> to vector<6x32xbf16>
    %cst = arith.constant dense<0.000000e+00> : vector<6x8xf32>
    %4 = tpu.matmul %3, %1, %cst {dimension_numbers = #tpu.dot_dimension_numbers<[1], [1], [0], [0], [0, 0, 1, 0], [], []>} : vector<6x32xbf16>, vector<8x32xbf16>, vector<6x8xf32> -> vector<6x8xf32>
    %cst_5 = arith.constant dense<0xFF800000> : vector<6xf32>
    %5 = vector.multi_reduction <maximumf>, %4, %cst_5 [1] : vector<6x8xf32> to vector<6xf32>
    %cst_6 = arith.constant 0xFF800000 : f32
    %6 = vector.broadcast %cst_6 : f32 to vector<6xf32>
    %7 = arith.maximumf %6, %5 : vector<6xf32>
    %8 = vector.shape_cast %7 : vector<6xf32> to vector<6x1xf32>
    %9 = vector.broadcast %8 : vector<6x1xf32> to vector<6x8xf32>
    %10 = arith.subf %4, %9 : vector<6x8xf32>
    %11 = math.exp %10 : vector<6x8xf32>
    %cst_7 = arith.constant dense<0.000000e+00> : vector<6xf32>
    %12 = vector.multi_reduction <add>, %11, %cst_7 [1] : vector<6x8xf32> to vector<6xf32>
    %13 = vector.shape_cast %12 : vector<6xf32> to vector<6x1xf32>
    %14 = vector.broadcast %13 : vector<6x1xf32> to vector<6x8xf32>
    %15 = arith.divf %11, %14 : vector<6x8xf32>
    %16 = arith.truncf %15 : vector<6x8xf32> to vector<6x8xbf16>
    %cst_8 = arith.constant dense<0.000000e+00> : vector<6x32xf32>
    %17 = tpu.matmul %16, %1, %cst_8 {dimension_numbers = #tpu.dot_dimension_numbers<[1], [0], [0], [1], [0, 0, 1, 1], [], []>} : vector<6x8xbf16>, vector<8x32xbf16>, vector<6x32xf32> -> vector<6x32xf32>
    %18 = arith.truncf %17 : vector<6x32xf32> to vector<6x32xbf16>
    %c0_9 = arith.constant 0 : index
    %c0_10 = arith.constant 0 : index
    %c0_11 = arith.constant 0 : index
    %19 = vector.load %arg3[%c0_9, %c0_10, %c0_11] : memref<1x6x32xbf16, #tpu.memory_space<vmem>>, vector<1x6x32xbf16>
    %20 = vector.shape_cast %19 : vector<1x6x32xbf16> to vector<6x32xbf16>
    %21 = vector.shape_cast %18 : vector<6x32xbf16> to vector<1x6x32xbf16>
    tpu.vector_store %arg3[%c0_9, %c0_10, %c0_11], %21 {strides = array<i32>} : memref<1x6x32xbf16, #tpu.memory_space<vmem>>, vector<1x6x32xbf16>,
    return
  }
  func.func @transform_0(%arg0: i32) -> (i32, i32, i32) {
    %c0_i32 = arith.constant 0 : i32
    %c0_i32_0 = arith.constant 0 : i32
    %c0_i32_1 = arith.constant 0 : i32
    return %arg0, %c0_i32, %c0_i32_0 : i32, i32, i32
  }
  func.func @transform_1(%arg0: i32) -> (i32, i32, i32) {
    %c0_i32 = arith.constant 0 : i32
    %c0_i32_0 = arith.constant 0 : i32
    %c0_i32_1 = arith.constant 0 : i32
    return %arg0, %c0_i32, %c0_i32_0 : i32, i32, i32
  }
  func.func @transform_2(%arg0: i32) -> (i32, i32, i32) {
    %c0_i32 = arith.constant 0 : i32
    %c0_i32_0 = arith.constant 0 : i32
    %c0_i32_1 = arith.constant 0 : i32
    return %arg0, %c0_i32, %c0_i32_0 : i32, i32, i32
  }
}

module attributes {stable_mosaic.version = 11 : i64} {
  func.func @head_kernel(%arg0: i32, %arg1: i32, %arg2: memref<48x32xbf16, #tpu.memory_space<vmem>>, %arg3: memref<48x32xbf16, #tpu.memory_space<vmem>>, %arg4: memref<32x32xbf16, #tpu.memory_space<vmem>>, %arg5: memref<32x32xbf16, #tpu.memory_space<vmem>>, %arg6: memref<1x32xf32, #tpu.memory_space<vmem>>, %arg7: memref<32x128xbf16, #tpu.memory_space<vmem>>, %arg8: memref<1x128xf32, #tpu.memory_space<vmem>>, %arg9: memref<48x128xf32, #tpu.memory_space<vmem>>, %arg10: memref<48x32xbf16, #tpu.memory_space<vmem>>) attributes {dimension_semantics = [#tpu.dimension_semantics<parallel>, #tpu.dimension_semantics<arbitrary>], iteration_bounds = array<i64: 1, 1>, scalar_prefetch = 0 : i64, scratch_operands = 1 : i64, tpu.core_type = #tpu.core_type<tc>, window_params = [{transform_indices = @transform_0, window_bounds = array<i64: 48, 32>}, {transform_indices = @transform_1, window_bounds = array<i64: 48, 32>}, {pipeline_mode = #tpu.pipeline_mode<synchronous>, transform_indices = @transform_2, window_bounds = array<i64: 32, 32>}, {pipeline_mode = #tpu.pipeline_mode<synchronous>, transform_indices = @transform_3, window_bounds = array<i64: 32, 32>}, {pipeline_mode = #tpu.pipeline_mode<synchronous>, transform_indices = @transform_4, window_bounds = array<i64: 1, 32>}, {transform_indices = @transform_5, window_bounds = array<i64: 32, 128>}, {transform_indices = @transform_6, window_bounds = array<i64: 1, 128>}, {transform_indices = @transform_7, window_bounds = array<i64: 48, 128>}]} {
    %c0_i32 = arith.constant 0 : i32
    %0 = arith.cmpi eq, %arg1, %c0_i32 : i32
    %1 = arith.extui %0 : i1 to i32
    %c0_i32_0 = arith.constant 0 : i32
    %2 = arith.cmpi ne, %1, %c0_i32_0 : i32
    scf.if %2 {
      %c0_8 = arith.constant 0 : index
      %c0_9 = arith.constant 0 : index
      %10 = vector.load %arg2[%c0_8, %c0_9] : memref<48x32xbf16, #tpu.memory_space<vmem>>, vector<48x32xbf16>
      %c0_10 = arith.constant 0 : index
      %c0_11 = arith.constant 0 : index
      %11 = vector.load %arg4[%c0_10, %c0_11] : memref<32x32xbf16, #tpu.memory_space<vmem>>, vector<32x32xbf16>
      %cst_12 = arith.constant dense<0.000000e+00> : vector<48x32xf32>
      %12 = tpu.matmul %10, %11, %cst_12 {dimension_numbers = #tpu.dot_dimension_numbers<[1], [0], [0], [1], [0, 0, 1, 1], [], []>} : vector<48x32xbf16>, vector<32x32xbf16>, vector<48x32xf32> -> vector<48x32xf32>
      %c0_13 = arith.constant 0 : index
      %c0_14 = arith.constant 0 : index
      %13 = vector.load %arg3[%c0_13, %c0_14] : memref<48x32xbf16, #tpu.memory_space<vmem>>, vector<48x32xbf16>
      %c0_15 = arith.constant 0 : index
      %c0_16 = arith.constant 0 : index
      %14 = vector.load %arg5[%c0_15, %c0_16] : memref<32x32xbf16, #tpu.memory_space<vmem>>, vector<32x32xbf16>
      %cst_17 = arith.constant dense<0.000000e+00> : vector<48x32xf32>
      %15 = tpu.matmul %13, %14, %cst_17 {dimension_numbers = #tpu.dot_dimension_numbers<[1], [0], [0], [1], [0, 0, 1, 1], [], []>} : vector<48x32xbf16>, vector<32x32xbf16>, vector<48x32xf32> -> vector<48x32xf32>
      %16 = arith.addf %12, %15 : vector<48x32xf32>
      %c0_18 = arith.constant 0 : index
      %c0_19 = arith.constant 0 : index
      %17 = vector.load %arg6[%c0_18, %c0_19] : memref<1x32xf32, #tpu.memory_space<vmem>>, vector<1x32xf32>
      %18 = vector.broadcast %17 : vector<1x32xf32> to vector<48x32xf32>
      %19 = arith.addf %16, %18 : vector<48x32xf32>
      %20 = math.tanh %19 : vector<48x32xf32>
      %21 = arith.truncf %20 : vector<48x32xf32> to vector<48x32xbf16>
      %c0_20 = arith.constant 0 : index
      %c0_21 = arith.constant 0 : index
      %22 = vector.load %arg10[%c0_20, %c0_21] : memref<48x32xbf16, #tpu.memory_space<vmem>>, vector<48x32xbf16>
      tpu.vector_store %arg10[%c0_20, %c0_21], %21 {strides = array<i32>} : memref<48x32xbf16, #tpu.memory_space<vmem>>, vector<48x32xbf16>,
    } else {
    }
    %c0 = arith.constant 0 : index
    %c0_1 = arith.constant 0 : index
    %3 = vector.load %arg10[%c0, %c0_1] : memref<48x32xbf16, #tpu.memory_space<vmem>>, vector<48x32xbf16>
    %c0_2 = arith.constant 0 : index
    %c0_3 = arith.constant 0 : index
    %4 = vector.load %arg7[%c0_2, %c0_3] : memref<32x128xbf16, #tpu.memory_space<vmem>>, vector<32x128xbf16>
    %cst = arith.constant dense<0.000000e+00> : vector<48x128xf32>
    %5 = tpu.matmul %3, %4, %cst {dimension_numbers = #tpu.dot_dimension_numbers<[1], [0], [0], [1], [0, 0, 1, 1], [], []>} : vector<48x32xbf16>, vector<32x128xbf16>, vector<48x128xf32> -> vector<48x128xf32>
    %c0_4 = arith.constant 0 : index
    %c0_5 = arith.constant 0 : index
    %6 = vector.load %arg8[%c0_4, %c0_5] : memref<1x128xf32, #tpu.memory_space<vmem>>, vector<1x128xf32>
    %7 = vector.broadcast %6 : vector<1x128xf32> to vector<48x128xf32>
    %8 = arith.addf %5, %7 : vector<48x128xf32>
    %c0_6 = arith.constant 0 : index
    %c0_7 = arith.constant 0 : index
    %9 = vector.load %arg9[%c0_6, %c0_7] : memref<48x128xf32, #tpu.memory_space<vmem>>, vector<48x128xf32>
    tpu.vector_store %arg9[%c0_6, %c0_7], %8 {strides = array<i32>} : memref<48x128xf32, #tpu.memory_space<vmem>>, vector<48x128xf32>,
    return
  }
  func.func @transform_0(%arg0: i32, %arg1: i32) -> (i32, i32) {
    %c0_i32 = arith.constant 0 : i32
    %c0_i32_0 = arith.constant 0 : i32
    return %arg0, %c0_i32 : i32, i32
  }
  func.func @transform_1(%arg0: i32, %arg1: i32) -> (i32, i32) {
    %c0_i32 = arith.constant 0 : i32
    %c0_i32_0 = arith.constant 0 : i32
    return %arg0, %c0_i32 : i32, i32
  }
  func.func @transform_2(%arg0: i32, %arg1: i32) -> (i32, i32) {
    %c0_i32 = arith.constant 0 : i32
    %c0_i32_0 = arith.constant 0 : i32
    %c0_i32_1 = arith.constant 0 : i32
    return %c0_i32, %c0_i32_0 : i32, i32
  }
  func.func @transform_3(%arg0: i32, %arg1: i32) -> (i32, i32) {
    %c0_i32 = arith.constant 0 : i32
    %c0_i32_0 = arith.constant 0 : i32
    %c0_i32_1 = arith.constant 0 : i32
    return %c0_i32, %c0_i32_0 : i32, i32
  }
  func.func @transform_4(%arg0: i32, %arg1: i32) -> (i32, i32) {
    %c0_i32 = arith.constant 0 : i32
    %c0_i32_0 = arith.constant 0 : i32
    %c0_i32_1 = arith.constant 0 : i32
    return %c0_i32, %c0_i32_0 : i32, i32
  }
  func.func @transform_5(%arg0: i32, %arg1: i32) -> (i32, i32) {
    %c0_i32 = arith.constant 0 : i32
    %c0_i32_0 = arith.constant 0 : i32
    return %c0_i32, %arg1 : i32, i32
  }
  func.func @transform_6(%arg0: i32, %arg1: i32) -> (i32, i32) {
    %c0_i32 = arith.constant 0 : i32
    %c0_i32_0 = arith.constant 0 : i32
    return %c0_i32, %arg1 : i32, i32
  }
  func.func @transform_7(%arg0: i32, %arg1: i32) -> (i32, i32) {
    %c0_i32 = arith.constant 0 : i32
    return %arg0, %arg1 : i32, i32
  }
}

</mosaic_0001>

<bundles_post_ra>
// kernel: _lambda_.6
= control target key start
LH: loop header
LB: loop body
LE: loop exit
PB: predicated region body
PF: predicated region fallthrough
CT: control target
= control target key end

     0   :  { %s401_s9 = smov 0   ;;  %s426_s0 = inlined_call_operand.vmem [shape: bf16[8,8,32], index: 0, kind: input, shape index: {}]   ;;  %s427_s1 = inlined_call_operand.vmem [shape: bf16[8,6,32], index: 1, kind: input, shape index: {}]   ;;  %s428_s2 = inlined_call_operand.vmem [shape: bf16[8,6,32], index: 2, kind: output, shape index: {}]  }
   0x1 LB: > { %s334_s10 = sadd.s32 4294967295, %s382_s9   ;;  %p338_p0 = scmp.ge.s32.totalorder %s382_s9, 1  ;;  %s382_s9 = sphi %s401_s9, %s12_s9  }
   0x2   : > { %p120_p1 = scmp.lt.s32.totalorder %s382_s9, 9 }
   0x4   : > { %p121_p2 = pnand %p338_p0, %p120_p1 }
   0x5   : > { %p144_p3 = scmp.lt.s32.totalorder (!%p121_p2), %s334_s10, 7  ;;  %v384_v0 = vmov (!%p121_p2), 0.0   ;;  %vm385_vm0 = vmmov (!%p121_p2), 0   ;;  %vm159_vm1 = vcmask (!%p121_p2), 261120   ;;  %vm206_vm2 = vcmask (!%p121_p2), 62464  }
   0x6   : > { %124 = sbr.rel (%p121_p2) target bundleno = 768 (0x300), region = 28  ;;  %350 = vmatprep.subr.bf16.mxu0 (!%p121_p2), %v384_v0  ;;  %352 = vmatprep.mubr.msk.bf16.mxu0 (!%p121_p2), %vm385_vm0, %v384_v0  ;;  %vm223_vm3 = vcmask (!%p121_p2), 1043456   ;;  %vm219_vm4 = vcmask (!%p121_p2), 64512   ;;  %vm267_vm5 = vcmask (!%p121_p2), 256000  }
   0x7   : > { %356 = vmatprep.subr.bf16.mxu1 (!%p121_p2), %v384_v0  ;;  %358 = vmatprep.mubr.msk.bf16.mxu1 (!%p121_p2), %vm385_vm0, %v384_v0 }
   0xd   : > { %s430_s10 = smov (!%p144_p3, %s334_s10), 7 }
   0xe   : > { %s409_s11 = sshll.u32 %s430_s10, 2 }
   0xf   : > { %s147_s14 = scalar_lea.vmem %s426_s0, %s409_s11  ;;  %s151_s17 = scalar_lea.vmem %s427_s1, %s409_s11 }
  0x10   : > { %v157_v1 = vld [vmem:[%s147_s14] sm:$0xf]  ;;  %s155_s20 = scalar_lea.vmem %s428_s2, %s409_s11 }
  0x11   : > { %v164_v2 = vsel %vm159_vm1, %v157_v1, 0  ;;  %v158_v3 = vld [vmem:[%s151_s17] sm:$0x7]  ;;  %v224_v14 = vsel %vm223_vm3, %v157_v1, 0 }
  0x12   : > { %351 = vmatpush3.bf16.xpose.msra.mxu0 %v164_v2  ;;  %357 = vmatpush3.bf16.msra.mxu1 %v224_v14 }
  0x19   : > { %353 = vmatmul.mubr.msk.bf16.vlgmr.msra.gmra.mrb[0].mxu0 %vm159_vm1, %v158_v3 }
  0xec   : > { %v200_v4 = vpop.f32.mrb[0].mxu0 }
  0xed   : > { %v354_v5 = vpop.f32.mrb[1].mxu0  ;;  %v207_v6 = vsel %vm206_vm2, %v200_v4, -inf }
  0xee   : > { %208 = vmax.xlane.f32.xlu0 %v207_v6  ;;  %v203_v7 = vpop.f32.mrb[2].mxu0 }
  0xef   : > { %v355_v8 = vpop.f32.mrb[3].mxu0 }
 0x17b   : > { %v209_v9 = vpop.xlane.xlu0 %208 }
 0x17c   : > { %v210_v10 = vsub.f32 %v200_v4, %v209_v9 }
 0x17e   : > { %v211_v11 = vmul.f32 1.442695, %v210_v10 }
 0x180   : > { %372 = vpow2.f32 %v211_v11 }
 0x18a   : > { %v373_v12 = vpop.eup %372 }
 0x18b   : > { %v213_v13 = vsel %vm206_vm2, %v373_v12, 0.0 }
 0x18c   : > { %214 = vadd.xlane.f32.xlu0 %v213_v13 }
 0x219   : > { %v215_v15 = vpop.xlane.xlu0 %214 }
 0x21a   : > { %374 = vrcp.f32 %v215_v15 }
 0x224   : > { %v375_v16 = vpop.eup %374 }
 0x225   : > { %v217_v17 = vmul.f32 %v375_v16, %v373_v12 }
 0x227   : > { %v218_v18 = vpack.c.bf16 %v217_v17, %v217_v17 }
 0x229   : > { %359 = vmatmul.mubr.msk.bf16.vlgmr.msra.gmra.mrb[0].mxu1 %vm219_vm4, %v218_v18 }
 0x2fc   : > { %v260_v19 = vpop.f32.mrb[0].mxu1 }
 0x2fd   : > { %v266_v20 = vpack.c.bf16 %v260_v19, %v260_v19  ;;  %v360_v21 = vpop.f32.mrb[1].mxu1 }
 0x2fe   : > { %v263_v22 = vpop.f32.mrb[2].mxu1 }
 0x2ff   : > { %268 = vst.msk [vmem:[%s155_s20] sm:$0x7] %vm267_vm5, %v266_v20  ;;  %v361_v23 = vpop.f32.mrb[3].mxu1 }
 0x300 PF: > { %s12_s9 = sadd.s32 1, %s382_s9  }
 0x301   : > { %p9_p4 = scmp.ge.s32.totalorder %s12_s9, 10  }
 0x303   :  { %11 = sbr.rel (!%p9_p4) target bundleno = 1 (0x1), region = 61 }

// kernel: _lambda_.4
= control target key start
LH: loop header
LB: loop body
LE: loop exit
PB: predicated region body
PF: predicated region fallthrough
CT: control target
= control target key end

     0   :  { %s1378_s24 = smov 0   ;;  %s1380_s25 = smov 0   ;;  %s1570_s0 = inlined_call_operand.vmem [shape: bf16[64,16], index: 0, kind: input, shape index: {}]   ;;  %s1571_s1 = inlined_call_operand.vmem [shape: f32[2,8,16], index: 1, kind: input, shape index: {}]   ;;  %s1572_s2 = inlined_call_operand.vmem [shape: bf16[2,16,48], index: 2, kind: input, shape index: {}]   ;;  %s1573_s3 = inlined_call_operand.vmem [shape: bf16[2,16,48], index: 3, kind: input, shape index: {}]   ;;  %s1574_s4 = inlined_call_operand.vmem [shape: f32[2,1,48], index: 4, kind: input, shape index: {}]   ;;  %s1575_s5 = inlined_call_operand.vmem [shape: f32[2,1,16], index: 5, kind: input, shape index: {}]   ;;  %s1576_s6 = inlined_call_operand.vmem [shape: bf16[16,8,16], index: 6, kind: output, shape index: {0}]   ;;  %s1577_s7 = inlined_call_operand.vmem [shape: f32[2,8,16], index: 7, kind: output, shape index: {1}]  }
   0x1   :  { %1581 = sst [smem:[#allocation9_spill]] %s1571_s1  ;;  %s1382_s26 = smov 0  }
   0x2   :  { %1582 = sst [smem:[#allocation10_spill]] %s1572_s2  ;;  %s1384_s27 = smov 0  }
   0x3   :  { %1583 = sst [smem:[#allocation11_spill]] %s1573_s3  ;;  %s1386_s28 = smov 0  }
   0x4 LB: > { %1584 = sst [smem:[#allocation4_spill]] %s1322_s26  ;;  %s27_s29 = sadd.s32 1, %s1322_s26  ;;  %s1330_s28 = sphi %s1386_s28, %s18_s28   ;;  %s1326_s27 = sphi %s1384_s27, %s1597_s27   ;;  %s1322_s26 = sphi %s1382_s26, %s1596_s26   ;;  %s1318_s25 = sphi %s1380_s25, %s1595_s25   ;;  %s1314_s24 = sphi %s1378_s24, %s1594_s24  }
   0x5   : > { %1585 = sst [smem:[#allocation5_spill]] %s1326_s27  ;;  %s30_s30 = sadd.s32 1, %s1326_s27 }
   0x6   : > { %1586 = sst [smem:[#allocation6_spill]] %s1330_s28  ;;  %p28_p0 = scmp.ge.s32.totalorder %s27_s29, 2 }
   0x7   : > { %p1122_p1 = scmp.ge.s32.totalorder %s1330_s28, 1  ;;  %p326_p2 = scmp.lt.s32.totalorder %s1330_s28, 5 }
   0x8   : > { %s1599_s29 = smov (%p28_p0, %s27_s29), 0  ;;  %s1601_s30 = smov (!%p28_p0, %s30_s30), %s1326_s27 }
   0x9   : > { %1587 = sst [smem:[#allocation7_spill]] %s1599_s29  ;;  %p327_p3 = pnand %p1122_p1, %p326_p2 }
   0xa   : > { %p32_p4 = scmp.ge.s32.totalorder %s1601_s30, 2  ;;  %s1123_s8 = sshll.u32 (!%p327_p3), %s1314_s24, 1 }
   0xb   : > { %330 = sbr.rel (%p327_p3) target bundleno = 2820 (0xb04), region = 44  ;;  %p406_p5 = scmp.lt.s32.totalorder (!%p327_p3), %s1318_s25, 1 }
   0xc   : > { %s1603_s30 = smov (%p32_p4, %s1601_s30), 0  ;;  %s393_s9 = ssub.s32 (!%p327_p3), 1, %s1123_s8 }
   0xd   : > { %1588 = sst [smem:[#allocation8_spill]] %s1603_s30  ;;  %s394_s10 = smul.u32 (!%p327_p3), %s1318_s25, %s393_s9 }
   0xe   : > { %s1131_s13 = sshll.u32 (!%p327_p3), %s1318_s25, 1  ;;  %s1589_s1 = sld [smem:[#allocation9_spill]] (!%p327_p3) }
   0xf   : > { %s395_s12 = sadd.s32 (!%p327_p3), %s1314_s24, %s394_s10  ;;  %s1590_s2 = sld [smem:[#allocation10_spill]] (!%p327_p3) }
  0x10   : > { %s1124_s14 = sshll.u32 (!%p327_p3), %s395_s12, 2  ;;  %s1591_s3 = sld [smem:[#allocation11_spill]] (!%p327_p3) }
  0x11   : > { %p397_p6 = scmp.lt.s32.totalorder (!%p327_p3), %s1124_s14, 7  ;;  %s431_s16 = sadd.s32 (!%p327_p3), %s1131_s13, %s395_s12 }
  0x12   : > { %s1416_s11 = scalar_select %p406_p5, %s1318_s25, 1 }
  0x13   : > { %s1605_s14 = smov (!%p397_p6, %s1124_s14), 7  ;;  %s1133_s20 = sshll.u32 %s431_s16, 2 }
  0x14   : > { %s1421_s15 = sshll.u32 %s1416_s11, 3  ;;  %s425_s26 = scalar_lea.vmem %s1575_s5, %s1416_s11 }
  0x15   : > { %s409_s18 = scalar_lea.vmem %s1589_s1, %s1421_s15  ;;  %s414_s21 = scalar_lea.vmem %s1590_s2, %s1421_s15 }
  0x16   : > { %s419_s8 = scalar_lea.vmem %s1591_s3, %s1421_s15  ;;  %s1125_s28 = sshll.u32 %s1605_s14, 2 }
  0x17   : > { %s400_s19 = scalar_lea.vmem %s1570_s0, %s1125_s28  ;;  %p433_p7 = scmp.lt.s32.totalorder %s1133_s20, 15 }
  0x18   : > { %s447_s23 = scalar_lea.vmem %s1577_s7, %s1421_s15  ;;  %p1136_p8 = scmp.ne.s32.totalorder %s1314_s24, 0 }
  0x19   : > { %s1607_s20 = smov (!%p433_p7, %s1133_s20), 15  ;;  %v453_v0 = vld [vmem:[%s409_s18] sm:$0xff] (!%p1136_p8)  ;;  %vm454_vm0 = vcmask (!%p1136_p8), 130048  }
  0x1a   : > { %s1134_s3 = sshll.u32 %s1607_s20, 2  ;;  %452 = sbr.rel (%p1136_p8) target bundleno = 33 (0x21), region = 48  ;;  %455 = vst.msk [vmem:[#allocation2] sm:$0xff] (!%p1136_p8), %vm454_vm0, %v453_v0 }
  0x1b   : > { %s1453_s30 = scalar_lea.vmem %s1576_s6, %s1134_s3 }
  0x21 PF: > { %v1264_v1 = vld [vmem:[%s414_s21] sm:$0xff]   ;;  %v1332_v2 = vmov 0.0   ;;  %vm1333_vm1 = vmmov 0   ;;  %vm485_vm2 = vcmask 130048   ;;  %v1267_v7 = vld [vmem:[%s400_s19 + $0x8] sm:$0xff]   ;;  %s1334_s3 = smov 32   ;;  %s1592_s27 = scalar_lea.vmem %s1574_s4, %s1416_s11 }
  0x22   : > { %1194 = vmatprep.subr.bf16.mxu1 %v1332_v2  ;;  %v1457_v3 = vld [vmem:[%s419_s8] sm:$0xff]   ;;  %1188 = vmatprep.subr.bf16.mxu0 %v1264_v1  ;;  %vm541_vm3 = vcmask 392192   ;;  %s1335_s28 = smov 96   ;;  %s1336_s29 = smov 16   ;;  %vm652_vm4 = vcmask 125952  }
  0x23   : > { %1196 = vmatprep.mubr.msk.bf16.mxu1 %vm1333_vm1, %v1332_v2  ;;  %v1266_v4 = vld [vmem:[%s400_s19] sm:$0xff]   ;;  %1195 = vmatpush3.bf16.msra.mxu1 %v1457_v3  ;;  %s551_s11 = smul.u32 24, %s1318_s25  ;;  %s1337_s13 = smov 112  }
  0x24   : > { %1189 = vmatpush3.bf16.msra.mxu0 %v1264_v1  ;;  %v549_v5 = vld [vmem:[#allocation2] sm:$0xff]  ;;  %1190 = vmatprep.mubr.msk.bf16.mxu0 %vm485_vm2, %v1266_v4  ;;  %s1149_s14 = sshll.u32 %s1318_s25, 3  ;;  %s740_s21 = ssub.s32 2, %s1318_s25 }
  0x25   : > { %v554_v6 = vpack.c.bf16 %v549_v5, %v549_v5  ;;  %v1146_v8 = vld [vmem:[%s425_s26] ss:$0 sm:$0xff]  ;;  %1200 = vmatprep.subr.bf16.mxu0 %v1332_v2  ;;  %1206 = vmatprep.subr.bf16.mxu1 %v1332_v2  ;;  %s552_s12 = scalar_lea.vmem [#allocation3], %s551_s11  ;;  %s1016_s18 = scalar_lea.vmem [#allocation3], %s1149_s14 }
  0x26   : > { %616 = vrot.lane.b32.xlu0 %v1146_v8, %s1334_s3  ;;  %v1137_v10 = vld [vmem:[%s1592_s27] ss:$0 sm:$0xff]  ;;  %s1156_s8 = sshll.u32 %s740_s21, 3  ;;  %s1161_s17 = smul.u32 4294967272, %s1318_s25 }
  0x27   : > { %1197 = vmatmul.mubr.msk.bf16.vlgmr.msra.gmra.mrb[0].mxu1 %vm485_vm2, %v554_v6  ;;  %1191 = vmatmul.mubr.msk.bf16.vlgmr.msra.gmra.mrb[0].mxu0 %vm485_vm2, %v1267_v7  ;;  %s742_s16 = scalar_lea.vmem [#allocation3], %s1156_s8  ;;  %s1173_s20 = smul.u32 12, %s1318_s25 }
  0x28   : > { %1201 = vmatpush3.bf16.msra.mxu0 %v1457_v3  ;;  %1202 = vmatprep.mubr.msk.bf16.mxu0 %vm1333_vm1, %v1332_v2  ;;  %s1027_s19 = scalar_lea.vmem [#allocation3], %s1161_s17  ;;  %s1154_s9 = sshll.u32 %s1318_s25, 2 }
  0x29   : > { %1207 = vmatpush3.bf16.msra.mxu1 %v1457_v3  ;;  %1208 = vmatprep.mubr.msk.bf16.mxu1 %vm1333_vm1, %v1332_v2  ;;  %s651_s22 = scalar_lea.vmem %s1453_s30, %s1173_s20  ;;  %s1160_s10 = sshll.u32 %s740_s21, 2 }
  0x2a   : > { %1212 = vmatprep.subr.bf16.mxu0 %v1332_v2  ;;  %s1019_s1 = scalar_lea.vmem %s1453_s30, %s1154_s9  ;;  %s824_s2 = scalar_lea.vmem %s1453_s30, %s1160_s10 }
  0x98   : > { %v1480_v9 = vpop.permute.xlu0 %616 }
  0xfa   : > { %v598_v11 = vpop.f32.mrb[0].mxu1  ;;  %v1192_v12 = vpop.f32.mrb[0].mxu0 }
  0xfb   : > { %v619_v13 = vadd.f32 %v1480_v9, %v598_v11  ;;  %v535_v14 = vadd.f32 %v1192_v12, %v1137_v10  ;;  %v1198_v15 = vpop.f32.mrb[1].mxu1  ;;  %v526_v16 = vpop.f32.mrb[1].mxu0 }
  0xfc   : > { %v527_v17 = vadd.f32 %v1137_v10, %v526_v16  ;;  %v601_v18 = vpop.f32.mrb[2].mxu1  ;;  %v1193_v19 = vpop.f32.mrb[2].mxu0 }
  0xfd   : > { %544 = vst.msk [vmem:[#allocation3 + $0x10] sm:$0xff] %vm541_vm3, %v535_v14  ;;  %621 = vrot.lane.b32.xlu0 %v619_v13, %s1335_s28  ;;  %v538_v20 = vadd.f32 %v1193_v19, %v1137_v10  ;;  %v1199_v21 = vpop.f32.mrb[3].mxu1  ;;  %v529_v22 = vpop.f32.mrb[3].mxu0 }
  0xfe   : > { %542 = vst.msk [vmem:[#allocation3] sm:$0xff] %vm541_vm3, %v527_v17  ;;  %v530_v23 = vadd.f32 %v1137_v10, %v529_v22 }
  0xff   : > { %545 = vst.msk [vmem:[#allocation3 + $0x18] sm:$0xff] %vm541_vm3, %v538_v20 }
 0x100   : > { %543 = vst.msk [vmem:[#allocation3 + $0x8] sm:$0xff] %vm541_vm3, %v530_v23 }
 0x101   : > { %638 = vrot.lane.b32.xlu0 %v549_v5, %s1336_s29 }
 0x107   : > { %v553_v24 = vld [vmem:[%s552_s12] sm:$0xff]  ;;  %v1150_v48 = vld [vmem:[%s1016_s18 + $0x8] sm:$0xff] }
 0x108   : > { %v604_v25 = vadd.f32 %v598_v11, %v553_v24  ;;  %v743_v7 = vld [vmem:[%s742_s16] sm:$0xff] }
 0x10a   : > { %v1145_v26 = vmul.f32 -1.442695, %v604_v25 }
 0x10c   : > { %1268 = vpow2.f32 %v1145_v26 }
 0x116   : > { %v1269_v27 = vpop.eup %1268 }
 0x117   : > { %v608_v28 = vadd.f32 1.0, %v1269_v27 }
 0x119   : > { %1270 = vrcp.f32 %v608_v28 }
 0x123   : > { %v1271_v29 = vpop.eup %1270 }
 0x124   : > { %v631_v36 = vsub.f32 1.0, %v1271_v29 }
 0x16f   : > { %v622_v30 = vpop.permute.xlu0 %621 }
 0x170   : > { %v624_v31 = vmul.f32 %v1271_v29, %v622_v30 }
 0x172   : > { %626 = vrot.lane.b32.xlu1 %v624_v31, %s1334_s3  ;;  %v1162_v31 = vld [vmem:[%s1027_s19 + $0x18] sm:$0xff] }
 0x173   : > { %v639_v35 = vpop.permute.xlu0 %638 }
 0x174   : > { %v641_v38 = vmul.f32 %v1271_v29, %v639_v35 }
 0x1e4   : > { %v627_v32 = vpop.permute.xlu1 %626 }
 0x1e5   : > { %v629_v33 = vadd.f32 %v627_v32, %v553_v24 }
 0x1e7   : > { %1272 = vtanh.f32 %v629_v33 }
 0x1f1   : > { %v1273_v34 = vpop.eup %1272 }
 0x1f2   : > { %633 = vrot.lane.b32.xlu1 %v1273_v34, %s1337_s13 }
 0x264   : > { %v634_v37 = vpop.permute.xlu1 %633 }
 0x265   : > { %v636_v39 = vmul.f32 %v634_v37, %v631_v36 }
 0x267   : > { %v642_v40 = vadd.f32 %v641_v38, %v636_v39 }
 0x269   : > { %v1496_v41 = vpack.c.bf16 %v642_v40, %v642_v40 }
 0x26b   : > { %658 = vrot.lane.b32.xlu1 %v1496_v41, %s1337_s13 }
 0x2dd   : > { %v659_v42 = vpop.permute.xlu1 %658 }
 0x2de   : > { %1203 = vmatmul.mubr.msk.bf16.vlgmr.msra.gmra.mrb[4].mxu0 %vm485_vm2, %v659_v42 }
 0x2df   : > { %1213 = vmatpush3.bf16.msra.mxu0 %v1457_v3  ;;  %1214 = vmatprep.mubr.msk.bf16.mxu0 %vm1333_vm1, %v1332_v2 }
 0x3b1   : > { %v697_v43 = vpop.f32.mrb[4].mxu0 }
 0x3b2   : > { %v710_v44 = vadd.f32 %v697_v43, %v1480_v9  ;;  %v1204_v45 = vpop.f32.mrb[5].mxu0  ;;  %v703_v49 = vadd.f32 %v1150_v48, %v697_v43 }
 0x3b3   : > { %v700_v46 = vpop.f32.mrb[6].mxu0 }
 0x3b4   : > { %712 = vrot.lane.b32.xlu0 %v710_v44, %s1335_s28  ;;  %v1205_v47 = vpop.f32.mrb[7].mxu0  ;;  %v1152_v50 = vmul.f32 -1.442695, %v703_v49 }
 0x3b6   : > { %1274 = vpow2.f32 %v1152_v50 }
 0x3c0   : > { %v1275_v51 = vpop.eup %1274 }
 0x3c1   : > { %v707_v52 = vadd.f32 1.0, %v1275_v51 }
 0x3c3   : > { %1276 = vrcp.f32 %v707_v52 }
 0x3cd   : > { %v1277_v53 = vpop.eup %1276 }
 0x3ce   : > { %v722_v59 = vsub.f32 1.0, %v1277_v53  ;;  %v728_v61 = vmul.f32 %v1277_v53, %v642_v40 }
 0x426   : > { %v713_v54 = vpop.permute.xlu0 %712 }
 0x427   : > { %v715_v55 = vmul.f32 %v1277_v53, %v713_v54 }
 0x429   : > { %717 = vrot.lane.b32.xlu1 %v715_v55, %s1334_s3 }
 0x49b   : > { %v718_v56 = vpop.permute.xlu1 %717 }
 0x49c   : > { %v720_v57 = vadd.f32 %v1150_v48, %v718_v56 }
 0x49e   : > { %1278 = vtanh.f32 %v720_v57 }
 0x4a8   : > { %v1279_v58 = vpop.eup %1278 }
 0x4a9   : > { %724 = vrot.lane.b32.xlu0 %v1279_v58, %s1337_s13 }
 0x51b   : > { %v725_v60 = vpop.permute.xlu0 %724 }
 0x51c   : > { %v727_v62 = vmul.f32 %v725_v60, %v722_v59 }
 0x51e   : > { %v729_v63 = vadd.f32 %v728_v61, %v727_v62 }
 0x520   : > { %v1509_v0 = vpack.c.bf16 %v729_v63, %v729_v63 }
 0x522   : > { %744 = vrot.lane.b32.xlu1 %v1509_v0, %s1337_s13 }
 0x594   : > { %v745_v1 = vpop.permute.xlu1 %744 }
 0x595   : > { %1209 = vmatmul.mubr.msk.bf16.vlgmr.msra.gmra.mrb[4].mxu1 %vm485_vm2, %v745_v1 }
 0x668   : > { %v783_v2 = vpop.f32.mrb[4].mxu1 }
 0x669   : > { %v796_v3 = vadd.f32 %v783_v2, %v1480_v9  ;;  %v1210_v4 = vpop.f32.mrb[5].mxu1  ;;  %v789_v8 = vadd.f32 %v783_v2, %v743_v7 }
 0x66a   : > { %v786_v5 = vpop.f32.mrb[6].mxu1 }
 0x66b   : > { %798 = vrot.lane.b32.xlu0 %v796_v3, %s1335_s28  ;;  %v1211_v6 = vpop.f32.mrb[7].mxu1  ;;  %v1158_v10 = vmul.f32 -1.442695, %v789_v8 }
 0x66d   : > { %1280 = vpow2.f32 %v1158_v10 }
 0x677   : > { %v1281_v11 = vpop.eup %1280 }
 0x678   : > { %v793_v12 = vadd.f32 1.0, %v1281_v11 }
 0x67a   : > { %1282 = vrcp.f32 %v793_v12 }
 0x684   : > { %v1283_v13 = vpop.eup %1282 }
 0x685   : > { %v808_v19 = vsub.f32 1.0, %v1283_v13  ;;  %v814_v21 = vmul.f32 %v1283_v13, %v729_v63 }
 0x6dd   : > { %v799_v14 = vpop.permute.xlu0 %798 }
 0x6de   : > { %v801_v15 = vmul.f32 %v1283_v13, %v799_v14 }
 0x6e0   : > { %803 = vrot.lane.b32.xlu1 %v801_v15, %s1334_s3 }
 0x752   : > { %v804_v16 = vpop.permute.xlu1 %803 }
 0x753   : > { %v806_v17 = vadd.f32 %v804_v16, %v743_v7 }
 0x755   : > { %1284 = vtanh.f32 %v806_v17 }
 0x75f   : > { %v1285_v18 = vpop.eup %1284 }
 0x760   : > { %810 = vrot.lane.b32.xlu0 %v1285_v18, %s1337_s13 }
 0x7d2   : > { %v811_v20 = vpop.permute.xlu0 %810 }
 0x7d3   : > { %v813_v22 = vmul.f32 %v811_v20, %v808_v19 }
 0x7d5   : > { %v815_v23 = vadd.f32 %v814_v21, %v813_v22 }
 0x7d7   : > { %v816_v24 = vpack.c.bf16 %v815_v23, %v815_v23 }
 0x7d9   : > { %831 = vrot.lane.b32.xlu1 %v816_v24, %s1337_s13 }
 0x84b   : > { %v832_v25 = vpop.permute.xlu1 %831 }
 0x84c   : > { %1215 = vmatmul.mubr.msk.bf16.vlgmr.msra.gmra.mrb[8].mxu0 %vm485_vm2, %v832_v25 }
 0x91f   : > { %v870_v26 = vpop.f32.mrb[8].mxu0 }
 0x920   : > { %v883_v27 = vadd.f32 %v870_v26, %v1480_v9  ;;  %v1216_v28 = vpop.f32.mrb[9].mxu0  ;;  %v876_v32 = vadd.f32 %v1162_v31, %v870_v26 }
 0x921   : > { %v873_v29 = vpop.f32.mrb[10].mxu0 }
 0x922   : > { %885 = vrot.lane.b32.xlu0 %v883_v27, %s1335_s28  ;;  %v1217_v30 = vpop.f32.mrb[11].mxu0  ;;  %v1164_v33 = vmul.f32 -1.442695, %v876_v32 }
 0x924   : > { %1286 = vpow2.f32 %v1164_v33 }
 0x92e   : > { %v1287_v34 = vpop.eup %1286 }
 0x92f   : > { %v880_v35 = vadd.f32 1.0, %v1287_v34 }
 0x931   : > { %1288 = vrcp.f32 %v880_v35 }
 0x93b   : > { %v1289_v36 = vpop.eup %1288 }
 0x93c   : > { %v901_v44 = vmul.f32 %v1289_v36, %v815_v23 }
 0x994   : > { %v886_v37 = vpop.permute.xlu0 %885 }
 0x995   : > { %v888_v38 = vmul.f32 %v1289_v36, %v886_v37 }
 0x997   : > { %890 = vrot.lane.b32.xlu1 %v888_v38, %s1334_s3  ;;  %s1166_s3 = smul.u32 4294967284, %s1318_s25 }
 0x999   : > { %s1031_s24 = scalar_lea.vmem %s1453_s30, %s1166_s3 }
 0x99b   : > { %647 = vrot.lane.b32.xlu1 %v1496_v41, %s1337_s13  ;;  %v895_v41 = vsub.f32 1.0, %v1289_v36 }
 0x99f   : > { %820 = vrot.lane.b32.xlu1 %v816_v24, %s1337_s13 }
 0xa09   : > { %v891_v9 = vpop.permute.xlu1 %890 }
 0xa0a   : > { %v893_v39 = vadd.f32 %v1162_v31, %v891_v9 }
 0xa0c   : > { %1290 = vtanh.f32 %v893_v39 }
 0xa0d   : > { %v648_v40 = vpop.permute.xlu1 %647 }
 0xa0e   : > { %653 = vst.msk [vmem:[%s651_s22] sm:$0xf] %vm652_vm4, %v648_v40 }
 0xa11   : > { %v821_v48 = vpop.permute.xlu1 %820 }
 0xa16   : > { %v1291_v42 = vpop.eup %1290 }
 0xa17   : > { %897 = vrot.lane.b32.xlu0 %v1291_v42, %s1337_s13 }
 0xa1b   : > { %734 = vrot.lane.b32.xlu0 %v1509_v0, %s1337_s13 }
 0xa89   : > { %v898_v43 = vpop.permute.xlu0 %897 }
 0xa8a   : > { %v900_v45 = vmul.f32 %v898_v43, %v895_v41 }
 0xa8c   : > { %v902_v46 = vadd.f32 %v901_v44, %v900_v45 }
 0xa8d   : > { %v735_v47 = vpop.permute.xlu0 %734 }
 0xa8e   : > { %1155 = vst.msk [vmem:[%s1019_s1 + $0x4] sm:$0xf] %vm652_vm4, %v735_v47  ;;  %914 = vrot.lane.b32.xlu1 %v902_v46, %s1337_s13  ;;  %v1176_v49 = vpack.c.bf16 %v902_v46, %v902_v46 }
 0xa8f   : > { %825 = vst.msk [vmem:[%s824_s2] sm:$0xf] %vm652_vm4, %v821_v48 }
 0xa90   : > { %907 = vrot.lane.b32.xlu0 %v1176_v49, %s1337_s13 }
 0xb00   : > { %v915_v50 = vpop.permute.xlu1 %914 }
 0xb01   : > { %917 = vst.msk [vmem:[#allocation2] sm:$0xff] %vm485_vm2, %v915_v50  ;;  %918 = vst.msk [vmem:[%s447_s23] sm:$0xff] %vm485_vm2, %v915_v50 }
 0xb02   : > { %v908_v51 = vpop.permute.xlu0 %907 }
 0xb03   : > { %1167 = vst.msk [vmem:[%s1031_s24 + $0xc] sm:$0xf] %vm652_vm4, %v908_v51 }
 0xb04 PF: > { %s1593_s28 = sld [smem:[#allocation6_spill]]  ;;  %s1594_s24 = sld [smem:[#allocation4_spill]] }
 0xb05   : > { %s1595_s25 = sld [smem:[#allocation5_spill]]  ;;  %s1596_s26 = sld [smem:[#allocation7_spill]] }
 0xb06   : > { %s1597_s27 = sld [smem:[#allocation8_spill]] }
 0xb0a   : > { %s18_s28 = sadd.s32 1, %s1593_s28  }
 0xb0b   : > { %p15_p9 = scmp.ge.s32.totalorder %s18_s28, 6  }
 0xb0d   :  { %17 = sbr.rel (!%p15_p9) target bundleno = 4 (0x4), region = 113 }

// kernel: _lambda_.5
= control target key start
LH: loop header
LB: loop body
LE: loop exit
PB: predicated region body
PF: predicated region fallthrough
CT: control target
= control target key end

     0   :  { %s1235_s24 = smov 0   ;;  %s1237_s25 = smov 0   ;;  %s1326_s0 = inlined_call_operand.vmem [shape: bf16[48,16], index: 0, kind: input, shape index: {}]   ;;  %s1327_s1 = inlined_call_operand.vmem [shape: f32[1,8,32], index: 1, kind: input, shape index: {}]   ;;  %s1328_s2 = inlined_call_operand.vmem [shape: bf16[1,16,96], index: 2, kind: input, shape index: {}]   ;;  %s1329_s3 = inlined_call_operand.vmem [shape: bf16[1,32,96], index: 3, kind: input, shape index: {}]   ;;  %s1330_s4 = inlined_call_operand.vmem [shape: f32[1,1,96], index: 4, kind: input, shape index: {}]   ;;  %s1331_s5 = inlined_call_operand.vmem [shape: f32[1,1,32], index: 5, kind: input, shape index: {}]   ;;  %s1332_s6 = inlined_call_operand.vmem [shape: bf16[6,8,32], index: 6, kind: output, shape index: {0}]   ;;  %s1333_s7 = inlined_call_operand.vmem [shape: f32[1,8,32], index: 7, kind: output, shape index: {1}]  }
   0x1   :  { %s1239_s26 = smov 0  }
   0x2 LB: > { %s27_s27 = sadd.s32 1, %s1184_s25  ;;  %p1039_p0 = scmp.ge.s32.totalorder %s1188_s26, 1  ;;  %s1188_s26 = sphi %s1239_s26, %s18_s26   ;;  %s1184_s25 = sphi %s1237_s25, %s1335_s25   ;;  %s1180_s24 = sphi %s1235_s24, %s1334_s24  }
   0x3   : > { %p28_p1 = scmp.ge.s32.totalorder %s27_s27, 2  ;;  %p326_p2 = scmp.lt.s32.totalorder %s1188_s26, 3 }
   0x5   : > { %s1337_s27 = smov (%p28_p1, %s27_s27), 0  ;;  %p327_p3 = pnand %p1039_p0, %p326_p2 }
   0x6   : > { %s396_s28 = smul.u32 (!%p327_p3), 3, %s1180_s24  ;;  %p1044_p5 = scmp.ne.s32.totalorder (!%p327_p3), %s1180_s24, 0 }
   0x7   : > { %330 = sbr.rel (%p327_p3) target bundleno = 2116 (0x844), region = 44 }
   0x8   : > { %p397_p4 = scmp.lt.s32.totalorder (!%p327_p3), %s396_s28, 5 }
   0xe   : > { %s1339_s28 = smov (!%p397_p4, %s396_s28), 5  ;;  %452 = sbr.rel (%p1044_p5) target bundleno = 21 (0x15), region = 48 }
   0xf   : > { %s1041_s29 = sshll.u32 %s1339_s28, 2  ;;  %v453_v0 = vld [vmem:[%s1327_s1] sm:$0xff] (!%p1044_p5)  ;;  %vm454_vm0 = vcmask (!%p1044_p5), 261120  }
  0x10   : > { %s400_s9 = scalar_lea.vmem %s1326_s0, %s1041_s29  ;;  %s1259_s12 = scalar_lea.vmem %s1332_s6, %s1041_s29  ;;  %455 = vst.msk [vmem:[#allocation2] sm:$0xff] (!%p1044_p5), %vm454_vm0, %v453_v0 }
  0x15 PF: > { %v1143_v1 = vld [vmem:[%s1328_s2] sm:$0xff]   ;;  %v1190_v2 = vmov 0.0   ;;  %vm482_vm1 = vcmask 130048   ;;  %v1146_v5 = vld [vmem:[%s400_s9 + $0x8] ss:$0 sps:$4 sm:$0xff]   ;;  %vm1191_vm2 = vmmov 0  }
  0x16   : > { %1090 = vmatprep.subr.bf16.mxu1 %v1190_v2  ;;  %v1144_v3 = vld [vmem:[%s1329_s3] sm:$0xff]   ;;  %1084 = vmatprep.subr.bf16.mxu0 %v1143_v1  ;;  %v1147_v6 = vld [vmem:[%s1329_s3 + $0x8] sm:$0xff]   ;;  %s1192_s23 = smov 64   ;;  %vm564_vm3 = vcmask 261120   ;;  %vm537_vm4 = vcmask 785408   ;;  %s1193_s29 = smov 32  }
  0x17   : > { %v1145_v4 = vld [vmem:[%s400_s9] sm:$0xff]   ;;  %1091 = vmatpush3.bf16.msra.mxu1 %v1144_v3  ;;  %1085 = vmatpush3.bf16.msra.mxu0 %v1143_v1  ;;  %s1194_s30 = smov 96   ;;  %vm656_vm5 = vcmask 257024  }
  0x18   : > { %1086 = vmatprep.mubr.msk.bf16.mxu0 %vm482_vm1, %v1145_v4  ;;  %1092 = vmatprep.subr.bf16.mxu1 %v1190_v2  ;;  %v546_v7 = vld [vmem:[#allocation2] sm:$0xff] }
  0x19   : > { %1094 = vmatprep.mubr.msk.bf16.mxu1 %vm1191_vm2, %v1190_v2  ;;  %v1055_v8 = vld [vmem:[%s1331_s5] ss:$0 sm:$0xff]  ;;  %1098 = vmatprep.subr.bf16.mxu0 %v1190_v2  ;;  %v551_v9 = vpack.c.bf16 %v546_v7, %v546_v7 }
  0x1a   : > { %1087 = vmatmul.mubr.msk.bf16.vlgmr.msra.gmra.mrb[0].mxu0 %vm482_vm1, %v1146_v5  ;;  %620 = vrot.lane.b32.xlu0 %v1055_v8, %s1192_s23  ;;  %v1045_v10 = vld [vmem:[%s1330_s4] ss:$0 sm:$0xff] }
  0x1b   : > { %1093 = vmatpush3.bf16.msra.mxu1 %v1147_v6  ;;  %1099 = vmatpush3.bf16.msra.mxu0 %v1144_v3 }
  0x1c   : > { %1100 = vmatprep.subr.bf16.mxu0 %v1190_v2  ;;  %1102 = vmatprep.mubr.msk.bf16.mxu0 %vm1191_vm2, %v1190_v2 }
  0x1d   : > { %1106 = vmatprep.subr.bf16.mxu1 %v1190_v2 }
  0x1e   : > { %1095 = vmatmul.mubr.msk.bf16.vlgmr.msra.gmra.mrb[0].mxu1 %vm564_vm3, %v551_v9 }
  0x1f   : > { %1101 = vmatpush3.bf16.msra.mxu0 %v1147_v6  ;;  %1107 = vmatpush3.bf16.msra.mxu1 %v1144_v3 }
  0x20   : > { %1108 = vmatprep.subr.bf16.mxu1 %v1190_v2  ;;  %1110 = vmatprep.mubr.msk.bf16.mxu1 %vm1191_vm2, %v1190_v2 }
  0x23   : > { %1109 = vmatpush3.bf16.msra.mxu1 %v1147_v6 }
  0x8c   : > { %v1284_v15 = vpop.permute.xlu0 %620 }
  0xed   : > { %v1088_v11 = vpop.f32.mrb[0].mxu0 }
  0xee   : > { %v532_v12 = vadd.f32 %v1088_v11, %v1045_v10  ;;  %v523_v13 = vpop.f32.mrb[1].mxu0 }
  0xef   : > { %v524_v14 = vadd.f32 %v1045_v10, %v523_v13  ;;  %v1089_v16 = vpop.f32.mrb[2].mxu0 }
  0xf0   : > { %540 = vst.msk [vmem:[#allocation3 + $0x10] sm:$0xff] %vm537_vm4, %v532_v12  ;;  %v526_v17 = vpop.f32.mrb[3].mxu0 }
  0xf1   : > { %538 = vst.msk [vmem:[#allocation3] sm:$0xff] %vm537_vm4, %v524_v14  ;;  %v602_v18 = vpop.f32.mrb[0].mxu1  ;;  %v527_v19 = vadd.f32 %v1045_v10, %v526_v17 }
  0xf2   : > { %v623_v20 = vadd.f32 %v1284_v15, %v602_v18  ;;  %v1096_v21 = vpop.f32.mrb[1].mxu1 }
  0xf3   : > { %v605_v22 = vpop.f32.mrb[2].mxu1  ;;  %539 = vst.msk [vmem:[#allocation3 + $0x8] sm:$0xff] %vm537_vm4, %v527_v19 }
  0xf4   : > { %625 = vrot.lane.b32.xlu0 %v623_v20, %s1192_s23  ;;  %v1097_v23 = vpop.f32.mrb[3].mxu1 }
  0xf8   : > { %642 = vrot.lane.b32.xlu0 %v546_v7, %s1193_s29  ;;  %v550_v24 = vld [vmem:[#allocation3] sm:$0xff]  ;;  %v1061_v7 = vld [vmem:[#allocation3 + $0x10] sm:$0xff] }
  0xf9   : > { %v608_v25 = vadd.f32 %v602_v18, %v550_v24 }
  0xfa   : > { %v659_v48 = vld [vmem:[#allocation3 + $0x8] sm:$0xff] }
  0xfb   : > { %v1054_v26 = vmul.f32 -1.442695, %v608_v25 }
  0xfd   : > { %1148 = vpow2.f32 %v1054_v26 }
 0x107   : > { %v1149_v27 = vpop.eup %1148 }
 0x108   : > { %v612_v28 = vadd.f32 1.0, %v1149_v27 }
 0x10a   : > { %1150 = vrcp.f32 %v612_v28 }
 0x114   : > { %v1151_v29 = vpop.eup %1150 }
 0x115   : > { %v635_v36 = vsub.f32 1.0, %v1151_v29 }
 0x166   : > { %v626_v30 = vpop.permute.xlu0 %625 }
 0x167   : > { %v628_v31 = vmul.f32 %v1151_v29, %v626_v30 }
 0x169   : > { %630 = vrot.lane.b32.xlu1 %v628_v31, %s1192_s23 }
 0x16a   : > { %v643_v35 = vpop.permute.xlu0 %642 }
 0x16b   : > { %v645_v38 = vmul.f32 %v1151_v29, %v643_v35 }
 0x1db   : > { %v631_v32 = vpop.permute.xlu1 %630 }
 0x1dc   : > { %v633_v33 = vadd.f32 %v631_v32, %v550_v24 }
 0x1de   : > { %1152 = vtanh.f32 %v633_v33 }
 0x1e8   : > { %v1153_v34 = vpop.eup %1152 }
 0x1e9   : > { %637 = vrot.lane.b32.xlu1 %v1153_v34, %s1194_s30 }
 0x25b   : > { %v638_v37 = vpop.permute.xlu1 %637 }
 0x25c   : > { %v640_v39 = vmul.f32 %v638_v37, %v635_v36 }
 0x25e   : > { %v646_v40 = vadd.f32 %v645_v38, %v640_v39 }
 0x260   : > { %v647_v41 = vpack.c.bf16 %v646_v40, %v646_v40 }
 0x262   : > { %660 = vrot.lane.b32.xlu1 %v647_v41, %s1194_s30 }
 0x2d4   : > { %v661_v42 = vpop.permute.xlu1 %660 }
 0x2d5   : > { %1103 = vmatmul.mubr.msk.bf16.vlgmr.msra.gmra.mrb[4].mxu0 %vm564_vm3, %v661_v42 }
 0x3a8   : > { %v699_v43 = vpop.f32.mrb[4].mxu0 }
 0x3a9   : > { %v712_v44 = vadd.f32 %v699_v43, %v1284_v15  ;;  %v1104_v45 = vpop.f32.mrb[5].mxu0  ;;  %v705_v49 = vadd.f32 %v699_v43, %v659_v48 }
 0x3aa   : > { %v702_v46 = vpop.f32.mrb[6].mxu0 }
 0x3ab   : > { %714 = vrot.lane.b32.xlu0 %v712_v44, %s1192_s23  ;;  %v1105_v47 = vpop.f32.mrb[7].mxu0  ;;  %v1058_v50 = vmul.f32 -1.442695, %v705_v49 }
 0x3ad   : > { %1154 = vpow2.f32 %v1058_v50 }
 0x3b7   : > { %v1155_v51 = vpop.eup %1154 }
 0x3b8   : > { %v709_v52 = vadd.f32 1.0, %v1155_v51 }
 0x3ba   : > { %1156 = vrcp.f32 %v709_v52 }
 0x3c4   : > { %v1157_v53 = vpop.eup %1156 }
 0x3c5   : > { %v724_v59 = vsub.f32 1.0, %v1157_v53  ;;  %v730_v61 = vmul.f32 %v1157_v53, %v646_v40 }
 0x41d   : > { %v715_v54 = vpop.permute.xlu0 %714 }
 0x41e   : > { %v717_v55 = vmul.f32 %v1157_v53, %v715_v54 }
 0x420   : > { %719 = vrot.lane.b32.xlu1 %v717_v55, %s1192_s23 }
 0x492   : > { %v720_v56 = vpop.permute.xlu1 %719 }
 0x493   : > { %v722_v57 = vadd.f32 %v720_v56, %v659_v48 }
 0x495   : > { %1158 = vtanh.f32 %v722_v57 }
 0x49f   : > { %v1159_v58 = vpop.eup %1158 }
 0x4a0   : > { %726 = vrot.lane.b32.xlu0 %v1159_v58, %s1194_s30 }
 0x512   : > { %v727_v60 = vpop.permute.xlu0 %726 }
 0x513   : > { %v729_v62 = vmul.f32 %v727_v60, %v724_v59 }
 0x515   : > { %v731_v63 = vadd.f32 %v730_v61, %v729_v62 }
 0x517   : > { %v732_v0 = vpack.c.bf16 %v731_v63, %v731_v63 }
 0x519   : > { %746 = vrot.lane.b32.xlu1 %v732_v0, %s1194_s30 }
 0x58b   : > { %v747_v1 = vpop.permute.xlu1 %746 }
 0x58c   : > { %1111 = vmatmul.mubr.msk.bf16.vlgmr.msra.gmra.mrb[4].mxu1 %vm564_vm3, %v747_v1 }
 0x65f   : > { %v785_v2 = vpop.f32.mrb[4].mxu1 }
 0x660   : > { %v798_v3 = vadd.f32 %v785_v2, %v1284_v15  ;;  %v1112_v4 = vpop.f32.mrb[5].mxu1  ;;  %v791_v8 = vadd.f32 %v1061_v7, %v785_v2 }
 0x661   : > { %v788_v5 = vpop.f32.mrb[6].mxu1 }
 0x662   : > { %800 = vrot.lane.b32.xlu0 %v798_v3, %s1192_s23  ;;  %v1113_v6 = vpop.f32.mrb[7].mxu1  ;;  %v1063_v9 = vmul.f32 -1.442695, %v791_v8 }
 0x664   : > { %1160 = vpow2.f32 %v1063_v9 }
 0x66e   : > { %v1161_v10 = vpop.eup %1160 }
 0x66f   : > { %v795_v11 = vadd.f32 1.0, %v1161_v10 }
 0x671   : > { %1162 = vrcp.f32 %v795_v11 }
 0x67b   : > { %v1163_v12 = vpop.eup %1162 }
 0x67c   : > { %v810_v19 = vsub.f32 1.0, %v1163_v12  ;;  %v816_v21 = vmul.f32 %v1163_v12, %v731_v63 }
 0x6d4   : > { %v801_v13 = vpop.permute.xlu0 %800 }
 0x6d5   : > { %v803_v14 = vmul.f32 %v1163_v12, %v801_v13 }
 0x6d7   : > { %805 = vrot.lane.b32.xlu1 %v803_v14, %s1192_s23 }
 0x6db   : > { %651 = vrot.lane.b32.xlu1 %v647_v41, %s1194_s30 }
 0x749   : > { %v806_v15 = vpop.permute.xlu1 %805 }
 0x74a   : > { %v808_v16 = vadd.f32 %v1061_v7, %v806_v15 }
 0x74c   : > { %1164 = vtanh.f32 %v808_v16 }
 0x74d   : > { %v652_v17 = vpop.permute.xlu1 %651 }
 0x74e   : > { %657 = vst.msk [vmem:[%s1259_s12] sm:$0xf] %vm656_vm5, %v652_v17 }
 0x756   : > { %v1165_v18 = vpop.eup %1164 }
 0x757   : > { %812 = vrot.lane.b32.xlu0 %v1165_v18, %s1194_s30 }
 0x75b   : > { %736 = vrot.lane.b32.xlu0 %v732_v0, %s1194_s30 }
 0x7c9   : > { %v813_v20 = vpop.permute.xlu0 %812 }
 0x7ca   : > { %v815_v22 = vmul.f32 %v813_v20, %v810_v19 }
 0x7cc   : > { %v817_v23 = vadd.f32 %v816_v21, %v815_v22 }
 0x7cd   : > { %v737_v24 = vpop.permute.xlu0 %736 }
 0x7ce   : > { %1060 = vst.msk [vmem:[%s1259_s12 + $0x4] sm:$0xf] %vm656_vm5, %v737_v24  ;;  %829 = vrot.lane.b32.xlu0 %v817_v23, %s1194_s30  ;;  %v1071_v25 = vpack.c.bf16 %v817_v23, %v817_v23 }
 0x7d0   : > { %822 = vrot.lane.b32.xlu1 %v1071_v25, %s1194_s30 }
 0x840   : > { %v830_v26 = vpop.permute.xlu0 %829 }
 0x841   : > { %832 = vst.msk [vmem:[#allocation2] sm:$0xff] %vm564_vm3, %v830_v26  ;;  %833 = vst.msk [vmem:[%s1333_s7] sm:$0xff] %vm564_vm3, %v830_v26 }
 0x842   : > { %v823_v27 = vpop.permute.xlu1 %822 }
 0x843   : > { %1065 = vst.msk [vmem:[%s1259_s12 + $0x8] sm:$0xf] %vm656_vm5, %v823_v27 }
 0x844 PF: > { %s18_s26 = sadd.s32 1, %s1188_s26   ;;  %s1334_s24 = smov %s1184_s25 }
 0x845   : > { %p15_p6 = scmp.ge.s32.totalorder %s18_s26, 4   ;;  %s1335_s25 = smov %s1337_s27 }
 0x847   :  { %17 = sbr.rel (!%p15_p6) target bundleno = 2 (0x2), region = 111 }

// kernel: _lambda_.7
= control target key start
LH: loop header
LB: loop body
LE: loop exit
PB: predicated region body
PF: predicated region fallthrough
CT: control target
= control target key end

     0   :  { %v482_v0 = vmov 0.0   ;;  %vm483_vm0 = vmmov 0   ;;  %vm78_vm1 = vcmask 261120   ;;  %s622_s3 = inlined_call_operand.vmem [shape: bf16[32,32], index: 3, kind: input, shape index: {}]   ;;  %s623_s1 = inlined_call_operand.vmem [shape: bf16[48,32], index: 1, kind: input, shape index: {}]   ;;  %s624_s2 = inlined_call_operand.vmem [shape: bf16[32,32], index: 2, kind: input, shape index: {}]   ;;  %s625_s0 = inlined_call_operand.vmem [shape: bf16[48,32], index: 0, kind: input, shape index: {}]   ;;  %s626_s5 = inlined_call_operand.vmem [shape: bf16[32,128], index: 5, kind: input, shape index: {}]   ;;  %s627_s4 = inlined_call_operand.vmem [shape: f32[1,32], index: 4, kind: input, shape index: {}]   ;;  %s628_s6 = inlined_call_operand.vmem [shape: f32[1,128], index: 6, kind: input, shape index: {}]   ;;  %s629_s7 = inlined_call_operand.vmem [shape: f32[48,128], index: 7, kind: output, shape index: {}]  }
   0x1   :  { %452 = vmatprep.subr.bf16.mxu1 %v482_v0  ;;  %v458_v1 = vld [vmem:[%s622_s3] sm:$0xff]   ;;  %412 = vmatprep.mubr.msk.bf16.mxu1 %vm483_vm0, %v482_v0  ;;  %v459_v2 = vld [vmem:[%s622_s3 + $0x8] sm:$0xff]   ;;  %v462_v7 = vld [vmem:[%s623_s1 + $0x10] sm:$0xff]  }
   0x2   :  { %404 = vmatprep.subr.bf16.mxu0 %v482_v0  ;;  %408 = vmatprep.mubr.msk.bf16.mxu0 %vm483_vm0, %v482_v0  ;;  %v460_v3 = vld [vmem:[%s623_s1 + $0x8] sm:$0xff]   ;;  %v461_v4 = vld [vmem:[%s624_s2] sm:$0xff]   ;;  %v467_v10 = vld [vmem:[%s625_s0 + $0x10] sm:$0xff]  }
   0x3   :  { %454 = vmatpush3.bf16.msra.mxu1 %v458_v1  ;;  %405 = vmatpush3.bf16.msra.mxu0 %v458_v1  ;;  %v464_v5 = vld [vmem:[%s623_s1] sm:$0xff]   ;;  %v463_v6 = vld [vmem:[%s624_s2 + $0x8] sm:$0xff]  }
   0x4   :  { %453 = vmatprep.subr.bf16.mxu1 %v482_v0  ;;  %406 = vmatprep.subr.bf16.mxu0 %v482_v0  ;;  %v465_v8 = vld [vmem:[%s625_s0] sm:$0xff]   ;;  %v466_v9 = vld [vmem:[%s625_s0 + $0x8] sm:$0xff]  }
   0x5   :  { %v468_v11 = vld [vmem:[%s626_s5] sm:$0xff]   ;;  %v469_v12 = vld [vmem:[%s626_s5 + $0x8] sm:$0xff]  }
   0x6   :  { %v382_v26 = vld [vmem:[%s627_s4] ss:$0 sm:$0xff] }
   0x7   :  { %455 = vmatpush3.bf16.msra.mxu1 %v459_v2  ;;  %407 = vmatpush3.bf16.msra.mxu0 %v459_v2  ;;  %v383_v62 = vld [vmem:[%s628_s6] ss:$0 sm:$0xff] }
   0x8   :  { %420 = vmatprep.subr.bf16.mxu1 %v482_v0  ;;  %436 = vmatprep.subr.bf16.mxu0 %v482_v0 }
   0xa   :  { %413 = vmatmul.mubr.msk.bf16.vlgmr.msra.gmra.mrb[0].mxu1 %vm78_vm1, %v460_v3  ;;  %409 = vmatmul.mubr.msk.bf16.vlgmr.msra.gmra.mrb[0].mxu0 %vm78_vm1, %v464_v5 }
   0xb   :  { %421 = vmatpush3.bf16.msra.mxu1 %v461_v4  ;;  %416 = vmatprep.mubr.msk.bf16.mxu1 %vm483_vm0, %v482_v0 }
   0xc   :  { %422 = vmatprep.subr.bf16.mxu1 %v482_v0  ;;  %440 = vmatprep.mubr.msk.bf16.mxu0 %vm483_vm0, %v482_v0 }
   0xd   :  { %437 = vmatpush3.bf16.msra.mxu0 %v468_v11 }
   0xe   :  { %438 = vmatprep.subr.bf16.mxu0 %v482_v0 }
   0xf   :  { %423 = vmatpush3.bf16.msra.mxu1 %v463_v6 }
  0x11   :  { %439 = vmatpush3.bf16.msra.mxu0 %v469_v12 }
  0x12   :  { %417 = vmatmul.mubr.msk.bf16.gmra.mrb[4].mxu1 %vm78_vm1, %v462_v7 }
  0x13   :  { %424 = vmatprep.mubr.msk.bf16.mxu1 %vm483_vm0, %v482_v0 }
  0x1a   :  { %425 = vmatmul.mubr.msk.bf16.vlgmr.msra.gmra.mrb[8].mxu1 %vm78_vm1, %v465_v8 }
  0x1b   :  { %428 = vmatprep.mubr.msk.bf16.mxu1 %vm483_vm0, %v482_v0 }
  0x22   :  { %429 = vmatmul.mubr.msk.bf16.gmra.mrb[12].mxu1 %vm78_vm1, %v466_v9 }
  0x23   :  { %432 = vmatprep.mubr.msk.bf16.mxu1 %vm483_vm0, %v482_v0 }
  0x2a   :  { %433 = vmatmul.mubr.msk.bf16.gmra.mrb[16].mxu1 %vm78_vm1, %v467_v10 }
  0xdd   :  { %v130_v13 = vpop.f32.mrb[0].mxu1  ;;  %v122_v14 = vpop.f32.mrb[0].mxu0 }
  0xde   :  { %v414_v15 = vpop.f32.mrb[1].mxu1  ;;  %v410_v16 = vpop.f32.mrb[1].mxu0 }
  0xdf   :  { %v133_v17 = vpop.f32.mrb[2].mxu1  ;;  %v125_v18 = vpop.f32.mrb[2].mxu0 }
  0xe0   :  { %v415_v19 = vpop.f32.mrb[3].mxu1  ;;  %v411_v20 = vpop.f32.mrb[3].mxu0 }
  0xe5   :  { %v138_v21 = vpop.f32.mrb[4].mxu1 }
  0xe6   :  { %v418_v22 = vpop.f32.mrb[5].mxu1 }
  0xe7   :  { %v141_v23 = vpop.f32.mrb[6].mxu1 }
  0xe8   :  { %v419_v24 = vpop.f32.mrb[7].mxu1 }
  0xed   :  { %v215_v25 = vpop.f32.mrb[8].mxu1 }
  0xee   :  { %v216_v27 = vadd.f32 %v215_v25, %v122_v14  ;;  %v426_v28 = vpop.f32.mrb[9].mxu1 }
  0xef   :  { %v218_v29 = vpop.f32.mrb[10].mxu1 }
  0xf0   :  { %v245_v30 = vadd.f32 %v382_v26, %v216_v27  ;;  %v219_v31 = vadd.f32 %v218_v29, %v125_v18  ;;  %v427_v32 = vpop.f32.mrb[11].mxu1 }
  0xf2   :  { %v246_v33 = vadd.f32 %v382_v26, %v219_v31  ;;  %470 = vtanh.f32 %v245_v30 }
  0xf4   :  { %472 = vtanh.f32 %v246_v33 }
  0xf5   :  { %v223_v34 = vpop.f32.mrb[12].mxu1 }
  0xf6   :  { %v224_v35 = vadd.f32 %v223_v34, %v130_v13  ;;  %v430_v36 = vpop.f32.mrb[13].mxu1 }
  0xf7   :  { %v226_v37 = vpop.f32.mrb[14].mxu1 }
  0xf8   :  { %v247_v38 = vadd.f32 %v382_v26, %v224_v35  ;;  %v227_v39 = vadd.f32 %v226_v37, %v133_v17  ;;  %v431_v40 = vpop.f32.mrb[15].mxu1 }
  0xfa   :  { %v248_v41 = vadd.f32 %v382_v26, %v227_v39  ;;  %474 = vtanh.f32 %v247_v38 }
  0xfc   :  { %476 = vtanh.f32 %v248_v41  ;;  %v471_v42 = vpop.eup %470 }
  0xfd   :  { %v231_v43 = vpop.f32.mrb[16].mxu1 }
  0xfe   :  { %v473_v44 = vpop.eup %472  ;;  %v232_v45 = vadd.f32 %v231_v43, %v138_v21  ;;  %v434_v46 = vpop.f32.mrb[17].mxu1 }
  0xff   :  { %v257_v47 = vpack.c.bf16 %v473_v44, %v471_v42  ;;  %v234_v48 = vpop.f32.mrb[18].mxu1 }
 0x100   :  { %v249_v49 = vadd.f32 %v382_v26, %v232_v45  ;;  %v235_v50 = vadd.f32 %v234_v48, %v141_v23  ;;  %v435_v51 = vpop.f32.mrb[19].mxu1 }
 0x101   :  { %260 = vst.msk [vmem:[#allocation2] sm:$0xff] %vm78_vm1, %v257_v47 }
 0x102   :  { %v250_v52 = vadd.f32 %v382_v26, %v235_v50  ;;  %478 = vtanh.f32 %v249_v49 }
 0x104   :  { %480 = vtanh.f32 %v250_v52  ;;  %v475_v53 = vpop.eup %474 }
 0x106   :  { %v477_v54 = vpop.eup %476 }
 0x107   :  { %v258_v55 = vpack.c.bf16 %v477_v54, %v475_v53 }
 0x108   :  { %v263_v56 = vld [vmem:[#allocation2] sm:$0xff] }
 0x109   :  { %261 = vst.msk [vmem:[#allocation2 + $0x8] sm:$0xff] %vm78_vm1, %v258_v55  ;;  %441 = vmatmul.mubr.msk.bf16.vlgmr.msra.gmra.mrb[4].mxu0 %vm78_vm1, %v263_v56 }
 0x10a   :  { %444 = vmatprep.mubr.msk.bf16.mxu0 %vm483_vm0, %v482_v0 }
 0x10c   :  { %v479_v57 = vpop.eup %478 }
 0x10e   :  { %v481_v58 = vpop.eup %480 }
 0x10f   :  { %v259_v59 = vpack.c.bf16 %v481_v58, %v479_v57 }
 0x110   :  { %v264_v60 = vld [vmem:[#allocation2 + $0x8] sm:$0xff] }
 0x111   :  { %262 = vst.msk [vmem:[#allocation2 + $0x10] sm:$0xff] %vm78_vm1, %v259_v59  ;;  %445 = vmatmul.mubr.msk.bf16.gmra.mrb[8].mxu0 %vm78_vm1, %v264_v60 }
 0x112   :  { %448 = vmatprep.mubr.msk.bf16.mxu0 %vm483_vm0, %v482_v0 }
 0x118   :  { %v265_v61 = vld [vmem:[#allocation2 + $0x10] sm:$0xff] }
 0x119   :  { %449 = vmatmul.mubr.msk.bf16.gmra.mrb[12].mxu0 %vm78_vm1, %v265_v61 }
 0x1dc   :  { %v333_v63 = vpop.f32.mrb[4].mxu0 }
 0x1dd   :  { %v334_v1 = vadd.f32 %v383_v62, %v333_v63  ;;  %v442_v2 = vpop.f32.mrb[5].mxu0 }
 0x1de   :  { %v336_v3 = vpop.f32.mrb[6].mxu0 }
 0x1df   :  { %356 = vst [vmem:[%s629_s7] sm:$0xff] %v334_v1  ;;  %v337_v4 = vadd.f32 %v383_v62, %v336_v3  ;;  %v443_v5 = vpop.f32.mrb[7].mxu0 }
 0x1e1   :  { %357 = vst [vmem:[%s629_s7 + $0x8] sm:$0xff] %v337_v4 }
 0x1e4   :  { %v341_v0 = vpop.f32.mrb[8].mxu0 }
 0x1e5   :  { %v342_v6 = vadd.f32 %v383_v62, %v341_v0  ;;  %v446_v7 = vpop.f32.mrb[9].mxu0 }
 0x1e6   :  { %v344_v8 = vpop.f32.mrb[10].mxu0 }
 0x1e7   :  { %358 = vst [vmem:[%s629_s7 + $0x10] sm:$0xff] %v342_v6  ;;  %v345_v9 = vadd.f32 %v383_v62, %v344_v8  ;;  %v447_v10 = vpop.f32.mrb[11].mxu0 }
 0x1e9   :  { %359 = vst [vmem:[%s629_s7 + $0x18] sm:$0xff] %v345_v9 }
 0x1ec   :  { %v349_v11 = vpop.f32.mrb[12].mxu0 }
 0x1ed   :  { %v350_v12 = vadd.f32 %v383_v62, %v349_v11  ;;  %v450_v13 = vpop.f32.mrb[13].mxu0 }
 0x1ee   :  { %v352_v14 = vpop.f32.mrb[14].mxu0 }
 0x1ef   :  { %360 = vst [vmem:[%s629_s7 + $0x20] sm:$0xff] %v350_v12  ;;  %v353_v15 = vadd.f32 %v383_v62, %v352_v14  ;;  %v451_v16 = vpop.f32.mrb[15].mxu0 }
 0x1f1   :  { %361 = vst [vmem:[%s629_s7 + $0x28] sm:$0xff] %v353_v15 }

</bundles_post_ra>
